<compile_context>
chip_gen: v7x
topology: tpu7x:2x2x1
jax: 0.10.0
libtpu: 0.0.40
codegen_flags: <defaults>
</compile_context>

<pallas_src>
import functools

import jax
import jax.numpy as jnp
from jax.experimental import pallas as pl
from jax.experimental.pallas import tpu as pltpu

LEAKY_SLOPE = 0.01                      # torch.nn.LeakyReLU default
TM_CAP = 256                            # whole batch in one m-tile when B <= 256
TK_CAP = 32768                          # upper bound on K tile (review: 4k-32k)
STREAM_BUDGET = 24 * 1024 * 1024        # double-buffered streamed bytes (data + W1 tiles)
VMEM_LIMIT = 48 * 1024 * 1024           # generation-safe scoped VMEM limit (fits v7x)


def _round_up(x, m):
    return (x + m - 1) // m * m


def _cdiv(a, b):
    return -(-a // b)


def _k_plan(snp_len, n1, *, tk_cap=TK_CAP, stream_budget=STREAM_BUDGET, tm_cap=TM_CAP):
    """K tiling used by BOTH init_params (pads W1 rows once) and model_forward.

    Picks the largest tk (multiple of 128) so the double-buffered streamed tiles
    (data [tm_cap, tk] bf16 + W1 [tk, n1] bf16, lane-padded) fit in
    `stream_budget`, then pads snp_len so tk * num_k covers it exactly.
    Zero padding is exact for the matmul and for L1 (|0| = 0).
    """
    n1_pad = max(_round_up(n1, 128), 128)
    per_tk = 2 * 2 * (tm_cap + n1_pad)              # 2 buffers x 2 bytes x rows-per-k-col
    tk_max = max(128, (stream_budget // per_tk) // 128 * 128)
    tk_max = min(tk_max, tk_cap)
    snp_128 = _round_up(snp_len, 128)
    num_k = max(1, _cdiv(snp_128, tk_max))
    tk = _round_up(_cdiv(snp_128, num_k), 128)
    return tk, num_k, tk * num_k


def _mlp_kernel(x_ref, w1_ref, b1_ref, w2_ref, b2_ref, w3_ref, b3_ref,
                w4_ref, b4_ref, h_ref, l1_ref, acc_ref, l1_vec_ref,
                *, inv_base_node):
    k = pl.program_id(1)

    @pl.when(k == 0)
    def _init():
        acc_ref[...] = jnp.zeros_like(acc_ref)
        l1_vec_ref[...] = jnp.zeros_like(l1_vec_ref)

    w1 = w1_ref[...]
    # fc1 partial product: bf16 x bf16 -> f32 accumulation on the MXU.
    acc_ref[...] += jnp.dot(x_ref[...], w1, preferred_element_type=jnp.float32)

    # ||W1||_1 folded into the K loop: abs + sublane reduce into a (1, n1) f32
    # scratch (the W1 tile is already resident in VMEM; rides VPU/XLU slack).
    l1_vec_ref[...] += jnp.sum(jnp.abs(w1).astype(jnp.float32), axis=0, keepdims=True)

    @pl.when(k == pl.num_programs(1) - 1)
    def _epilogue():
        def lrelu(v):
            return jnp.where(v > 0, v, LEAKY_SLOPE * v)

        # TODO(synk): Dropout(0.5) is stochastic in train mode; implemented as
        # eval-mode identity (deterministic inference semantics).
        h1 = lrelu(acc_ref[...] + b1_ref[...])
        h2 = lrelu(jnp.dot(h1.astype(jnp.bfloat16), w2_ref[...],
                           preferred_element_type=jnp.float32) + b2_ref[...])
        h3 = lrelu(jnp.dot(h2.astype(jnp.bfloat16), w3_ref[...],
                           preferred_element_type=jnp.float32) + b3_ref[...])
        # fc4 is [tm, bn] x [bn, 1]: keep it off the MXU (VPU mul + lane reduce).
        h4 = jnp.sum(h3 * w4_ref[...], axis=-1, keepdims=True) + b4_ref[...]
        h_ref[...] = h4.astype(h_ref.dtype)

        small_l1 = (jnp.sum(jnp.abs(w2_ref[...]).astype(jnp.float32), keepdims=True) +
                    jnp.sum(jnp.abs(w3_ref[...]).astype(jnp.float32), keepdims=True) +
                    jnp.sum(jnp.abs(w4_ref[...]), keepdims=True))
        # Same value is recomputed/written for every batch tile; benign identical-
        # value write race under megacore "parallel" splitting.
        l1_ref[...] = (jnp.sum(l1_vec_ref[...], keepdims=True) + small_l1) * inv_base_node


def model_forward(data, target, params, base_node, *, tm=None,
                  tk_cap=TK_CAP, stream_budget=STREAM_BUDGET):
    """Pallas implementation of Model.forward(data, target) -> (h, l1).

    Expects params in kernel-ready layout from init_params (built ONCE, not per
    call): W1 [snp_padded, 4*bn] bf16, W2 [4*bn, 2*bn] bf16, W3 [2*bn, bn] bf16,
    W4 [1, bn] f32 (nn.Linear native), biases f32 shaped [1, out].
    """
    del target  # unused by the reference forward pass
    (w1, b1), (w2, b2), (w3, b3), (w4, b4) = params
    B, snp_len = data.shape
    n1 = w1.shape[1]   # 4 * base_node
    n2 = w2.shape[1]   # 2 * base_node
    n3 = w3.shape[1]   # base_node

    tk, num_k, snp_padded = _k_plan(snp_len, n1, tk_cap=tk_cap,
                                    stream_budget=stream_budget)
    assert w1.shape[0] == snp_padded, (
        "W1 must be padded by init_params with the same k-plan", w1.shape, snp_padded)

    if tm is None:
        tm = min(_round_up(B, 8), TM_CAP)   # whole batch in one tile when B <= TM_CAP
    padded_b = _round_up(B, tm)
    num_m = padded_b // tm

    if data.dtype != jnp.bfloat16:
        data = data.astype(jnp.bfloat16)
    pad_b, pad_k = padded_b - B, snp_padded - snp_len
    if pad_b or pad_k:
        data = jnp.pad(data, ((0, pad_b), (0, pad_k)))

    kernel = functools.partial(_mlp_kernel, inv_base_node=1.0 / float(base_node))

    grid_spec = pltpu.PrefetchScalarGridSpec(
        num_scalar_prefetch=0,
        grid=(num_m, num_k),
        in_specs=[
            pl.BlockSpec((tm, tk), lambda m, k: (m, k)),    # data  (streamed, bf16)
            pl.BlockSpec((tk, n1), lambda m, k: (k, 0)),    # W1    (streamed, bf16)
            pl.BlockSpec((1, n1), lambda m, k: (0, 0)),     # b1    (resident)
            pl.BlockSpec((n1, n2), lambda m, k: (0, 0)),    # W2    (resident, bf16)
            pl.BlockSpec((1, n2), lambda m, k: (0, 0)),     # b2
            pl.BlockSpec((n2, n3), lambda m, k: (0, 0)),    # W3    (resident, bf16)
            pl.BlockSpec((1, n3), lambda m, k: (0, 0)),     # b3
            pl.BlockSpec((1, n3), lambda m, k: (0, 0)),     # W4 ([1, bn], f32)
            pl.BlockSpec((1, 1), lambda m, k: (0, 0)),      # b4
        ],
        out_specs=(
            pl.BlockSpec((tm, 1), lambda m, k: (m, 0)),     # h
            pl.BlockSpec((1, 1), lambda m, k: (0, 0)),      # l1
        ),
        scratch_shapes=[
            pltpu.VMEM((tm, n1), jnp.float32),   # fc1 accumulator
            pltpu.VMEM((1, n1), jnp.float32),    # per-column running sum(|W1|)
        ],
    )

    h, l1 = pl.pallas_call(
        kernel,
        grid_spec=grid_spec,
        out_shape=(
            jax.ShapeDtypeStruct((padded_b, 1), jnp.float32),
            jax.ShapeDtypeStruct((1, 1), jnp.float32),
        ),
        compiler_params=pltpu.CompilerParams(
            dimension_semantics=("parallel", "arbitrary"),
            vmem_limit_bytes=VMEM_LIMIT,
        ),
    )(data, w1, b1, w2, b2, w3, b3, w4, b4)
    return h[:B], l1[0, 0]


def init_params(key, snp_len, base_node, *, tk_cap=TK_CAP, stream_budget=STREAM_BUDGET):
    """nn.Linear-equivalent init, stored ONCE in kernel-ready layout.

    W1..W3 are stored as [in, out] (transpose of nn.Linear's [out, in]); W1 rows
    are zero-padded to the k-plan's snp_padded; W1/W2/W3 are bf16, W4 keeps its
    native [1, base_node] f32.  Forward math and L1(|W|) are layout-invariant,
    and zero padding contributes nothing to either.
    """
    n1 = base_node * 4
    _, _, snp_padded = _k_plan(snp_len, n1, tk_cap=tk_cap, stream_budget=stream_budget)
    dims = [(snp_len, n1),
            (n1, base_node * 2),
            (base_node * 2, base_node),
            (base_node, 1)]
    params = []
    for li, (fan_in, fan_out) in enumerate(dims):
        key, kw, kb = jax.random.split(key, 3)
        bound = fan_in ** -0.5
        w = jax.random.uniform(kw, (fan_out, fan_in), jnp.float32, -bound, bound)
        b = jax.random.uniform(kb, (fan_out,), jnp.float32, -bound, bound)
        if li == 0:
            w_k = jnp.pad(w.T, ((0, snp_padded - snp_len), (0, 0))).astype(jnp.bfloat16)
        elif li in (1, 2):
            w_k = w.T.astype(jnp.bfloat16)        # [in, out] bf16, VMEM-resident
        else:
            w_k = w                               # fc4 native [1, base_node] f32
        params.append((w_k, b.reshape(1, -1)))
    return params


def ref_forward(data, params, base_node):
    """Pure-JAX reference using the same (kernel-layout, bf16) params."""
    (w1, b1), (w2, b2), (w3, b3), (w4, b4) = params
    hp = jax.lax.Precision.HIGHEST
    x = jnp.pad(data.astype(jnp.float32),
                ((0, 0), (0, w1.shape[0] - data.shape[1])))

    def lrelu(v):
        return jnp.where(v > 0, v, LEAKY_SLOPE * v)

    y = lrelu(jnp.dot(x, w1.astype(jnp.float32), precision=hp) + b1)
    y = lrelu(jnp.dot(y, w2.astype(jnp.float32), precision=hp) + b2)
    y = lrelu(jnp.dot(y, w3.astype(jnp.float32), precision=hp) + b3)
    y = jnp.dot(y, w4.T, precision=hp) + b4
    l1 = (jnp.sum(jnp.abs(w1).astype(jnp.float32)) +
          jnp.sum(jnp.abs(w2).astype(jnp.float32)) +
          jnp.sum(jnp.abs(w3).astype(jnp.float32)) +
          jnp.sum(jnp.abs(w4))) / base_node
    return y, l1


if __name__ == "__main__":
    key = jax.random.PRNGKey(0)
    B, snp_len, base_node = 30, 1000, 8   # non-128-aligned snp_len exercises padding

    k_data, k_tgt, k_params = jax.random.split(key, 3)
    data = jax.random.normal(k_data, (B, snp_len), jnp.float32).astype(jnp.bfloat16)
    target = jax.random.normal(k_tgt, (B, 1), jnp.float32)  # unused, mirrors signature
    params = init_params(k_params, snp_len, base_node)

    h_ref, l1_ref = ref_forward(data, params, base_node)

    # Run 1: production-default tiling (whole batch in one m-tile, one big K tile,
    # W1 streamed exactly once).
    h, l1 = model_forward(data, target, params, base_node)
    jax.block_until_ready((h, l1))
    assert h.shape == (B, 1)
    assert jnp.allclose(h, h_ref, atol=2e-2, rtol=2e-2), (h, h_ref)
    assert jnp.allclose(l1, l1_ref, atol=1e-2, rtol=1e-3), (float(l1), float(l1_ref))

    # Run 2: force a multi-tile grid (2 m-tiles x 4 K-tiles) to exercise the
    # accumulator / epilogue / batch+K padding paths.
    h2, l12 = model_forward(data, target, params, base_node, tm=16, tk_cap=256)
    jax.block_until_ready((h2, l12))
    assert jnp.allclose(h2, h_ref, atol=2e-2, rtol=2e-2), (h2, h_ref)
    assert jnp.allclose(l12, l1_ref, atol=1e-2, rtol=1e-3), (float(l12), float(l1_ref))

    print("KERNEL_OK")
</pallas_src>

<mosaic_0001>
module attributes {stable_mosaic.version = 11 : i64} {
  func.func @_mlp_kernel(%arg0: i32, %arg1: i32, %arg2: memref<32x1024xbf16, #tpu.memory_space<vmem>>, %arg3: memref<1024x32xbf16, #tpu.memory_space<vmem>>, %arg4: memref<1x32xf32, #tpu.memory_space<vmem>>, %arg5: memref<32x16xbf16, #tpu.memory_space<vmem>>, %arg6: memref<1x16xf32, #tpu.memory_space<vmem>>, %arg7: memref<16x8xbf16, #tpu.memory_space<vmem>>, %arg8: memref<1x8xf32, #tpu.memory_space<vmem>>, %arg9: memref<1x8xf32, #tpu.memory_space<vmem>>, %arg10: memref<1x1xf32, #tpu.memory_space<vmem>>, %arg11: memref<32x1xf32, #tpu.memory_space<vmem>>, %arg12: memref<1x1xf32, #tpu.memory_space<vmem>>, %arg13: memref<32x32xf32, #tpu.memory_space<vmem>>, %arg14: memref<1x32xf32, #tpu.memory_space<vmem>>) attributes {dimension_semantics = [#tpu.dimension_semantics<parallel>, #tpu.dimension_semantics<arbitrary>], iteration_bounds = array<i64: 1, 1>, scalar_prefetch = 0 : i64, scratch_operands = 2 : i64, tpu.core_type = #tpu.core_type<tc>, window_params = [{transform_indices = @transform_0, window_bounds = array<i64: 32, 1024>}, {transform_indices = @transform_1, window_bounds = array<i64: 1024, 32>}, {pipeline_mode = #tpu.pipeline_mode<synchronous>, transform_indices = @transform_2, window_bounds = array<i64: 1, 32>}, {pipeline_mode = #tpu.pipeline_mode<synchronous>, transform_indices = @transform_3, window_bounds = array<i64: 32, 16>}, {pipeline_mode = #tpu.pipeline_mode<synchronous>, transform_indices = @transform_4, window_bounds = array<i64: 1, 16>}, {pipeline_mode = #tpu.pipeline_mode<synchronous>, transform_indices = @transform_5, window_bounds = array<i64: 16, 8>}, {pipeline_mode = #tpu.pipeline_mode<synchronous>, transform_indices = @transform_6, window_bounds = array<i64: 1, 8>}, {pipeline_mode = #tpu.pipeline_mode<synchronous>, transform_indices = @transform_7, window_bounds = array<i64: 1, 8>}, {pipeline_mode = #tpu.pipeline_mode<synchronous>, transform_indices = @transform_8, window_bounds = array<i64: 1, 1>}, {transform_indices = @transform_9, window_bounds = array<i64: 32, 1>}, {pipeline_mode = #tpu.pipeline_mode<synchronous>, transform_indices = @transform_10, window_bounds = array<i64: 1, 1>}]} {
    %c0_i32 = arith.constant 0 : i32
    %0 = arith.cmpi eq, %arg1, %c0_i32 : i32
    %1 = arith.extui %0 : i1 to i32
    %c0_i32_0 = arith.constant 0 : i32
    %2 = arith.cmpi ne, %1, %c0_i32_0 : i32
    scf.if %2 {
      %cst_15 = arith.constant 0.000000e+00 : f32
      %19 = vector.broadcast %cst_15 : f32 to vector<32x32xf32>
      %c0_16 = arith.constant 0 : index
      %c0_17 = arith.constant 0 : index
      %20 = vector.load %arg13[%c0_16, %c0_17] : memref<32x32xf32, #tpu.memory_space<vmem>>, vector<32x32xf32>
      tpu.vector_store %arg13[%c0_16, %c0_17], %19 {strides = array<i32>} : memref<32x32xf32, #tpu.memory_space<vmem>>, vector<32x32xf32>,
      %cst_18 = arith.constant 0.000000e+00 : f32
      %21 = vector.broadcast %cst_18 : f32 to vector<1x32xf32>
      %c0_19 = arith.constant 0 : index
      %c0_20 = arith.constant 0 : index
      %22 = vector.load %arg14[%c0_19, %c0_20] : memref<1x32xf32, #tpu.memory_space<vmem>>, vector<1x32xf32>
      tpu.vector_store %arg14[%c0_19, %c0_20], %21 {strides = array<i32>} : memref<1x32xf32, #tpu.memory_space<vmem>>, vector<1x32xf32>,
    } else {
    }
    %c0 = arith.constant 0 : index
    %c0_1 = arith.constant 0 : index
    %3 = vector.load %arg3[%c0, %c0_1] : memref<1024x32xbf16, #tpu.memory_space<vmem>>, vector<1024x32xbf16>
    %c0_2 = arith.constant 0 : index
    %c0_3 = arith.constant 0 : index
    %4 = vector.load %arg13[%c0_2, %c0_3] : memref<32x32xf32, #tpu.memory_space<vmem>>, vector<32x32xf32>
    %c0_4 = arith.constant 0 : index
    %c0_5 = arith.constant 0 : index
    %5 = vector.load %arg2[%c0_4, %c0_5] : memref<32x1024xbf16, #tpu.memory_space<vmem>>, vector<32x1024xbf16>
    %cst = arith.constant dense<0.000000e+00> : vector<32x32xf32>
    %6 = tpu.matmul %5, %3, %cst {dimension_numbers = #tpu.dot_dimension_numbers<[1], [0], [0], [1], [0, 0, 1, 1], [], []>} : vector<32x1024xbf16>, vector<1024x32xbf16>, vector<32x32xf32> -> vector<32x32xf32>
    %7 = arith.addf %4, %6 : vector<32x32xf32>
    %c0_6 = arith.constant 0 : index
    %c0_7 = arith.constant 0 : index
    %8 = vector.load %arg13[%c0_6, %c0_7] : memref<32x32xf32, #tpu.memory_space<vmem>>, vector<32x32xf32>
    tpu.vector_store %arg13[%c0_6, %c0_7], %7 {strides = array<i32>} : memref<32x32xf32, #tpu.memory_space<vmem>>, vector<32x32xf32>,
    %c0_8 = arith.constant 0 : index
    %c0_9 = arith.constant 0 : index
    %9 = vector.load %arg14[%c0_8, %c0_9] : memref<1x32xf32, #tpu.memory_space<vmem>>, vector<1x32xf32>
    %10 = math.absf %3 : vector<1024x32xbf16>
    %11 = arith.extf %10 : vector<1024x32xbf16> to vector<1024x32xf32>
    %cst_10 = arith.constant dense<0.000000e+00> : vector<32xf32>
    %12 = vector.multi_reduction <add>, %11, %cst_10 [0] : vector<1024x32xf32> to vector<32xf32>
    %13 = vector.shape_cast %12 : vector<32xf32> to vector<1x32xf32>
    %14 = arith.addf %9, %13 : vector<1x32xf32>
    %c0_11 = arith.constant 0 : index
    %c0_12 = arith.constant 0 : index
    %15 = vector.load %arg14[%c0_11, %c0_12] : memref<1x32xf32, #tpu.memory_space<vmem>>, vector<1x32xf32>
    tpu.vector_store %arg14[%c0_11, %c0_12], %14 {strides = array<i32>} : memref<1x32xf32, #tpu.memory_space<vmem>>, vector<1x32xf32>,
    %c0_i32_13 = arith.constant 0 : i32
    %16 = arith.cmpi eq, %arg1, %c0_i32_13 : i32
    %17 = arith.extui %16 : i1 to i32
    %c0_i32_14 = arith.constant 0 : i32
    %18 = arith.cmpi ne, %17, %c0_i32_14 : i32
    scf.if %18 {
      %c0_15 = arith.constant 0 : index
      %c0_16 = arith.constant 0 : index
      %19 = vector.load %arg13[%c0_15, %c0_16] : memref<32x32xf32, #tpu.memory_space<vmem>>, vector<32x32xf32>
      %c0_17 = arith.constant 0 : index
      %c0_18 = arith.constant 0 : index
      %20 = vector.load %arg4[%c0_17, %c0_18] : memref<1x32xf32, #tpu.memory_space<vmem>>, vector<1x32xf32>
      %21 = vector.broadcast %20 : vector<1x32xf32> to vector<32x32xf32>
      %22 = arith.addf %19, %21 : vector<32x32xf32>
      %cst_19 = arith.constant 0.000000e+00 : f32
      %23 = vector.broadcast %cst_19 : f32 to vector<32x32xf32>
      %24 = arith.cmpf ogt, %22, %23 : vector<32x32xf32>
      %cst_20 = arith.constant 0.00999999977 : f32
      %25 = vector.broadcast %cst_20 : f32 to vector<32x32xf32>
      %26 = arith.mulf %25, %22 : vector<32x32xf32>
      %27 = arith.select %24, %22, %26 : vector<32x32xi1>, vector<32x32xf32>
      %28 = arith.truncf %27 : vector<32x32xf32> to vector<32x32xbf16>
      %c0_21 = arith.constant 0 : index
      %c0_22 = arith.constant 0 : index
      %29 = vector.load %arg5[%c0_21, %c0_22] : memref<32x16xbf16, #tpu.memory_space<vmem>>, vector<32x16xbf16>
      %cst_23 = arith.constant dense<0.000000e+00> : vector<32x16xf32>
      %30 = tpu.matmul %28, %29, %cst_23 {dimension_numbers = #tpu.dot_dimension_numbers<[1], [0], [0], [1], [0, 0, 1, 1], [], []>} : vector<32x32xbf16>, vector<32x16xbf16>, vector<32x16xf32> -> vector<32x16xf32>
      %c0_24 = arith.constant 0 : index
      %c0_25 = arith.constant 0 : index
      %31 = vector.load %arg6[%c0_24, %c0_25] : memref<1x16xf32, #tpu.memory_space<vmem>>, vector<1x16xf32>
      %32 = vector.broadcast %31 : vector<1x16xf32> to vector<32x16xf32>
      %33 = arith.addf %30, %32 : vector<32x16xf32>
      %cst_26 = arith.constant 0.000000e+00 : f32
      %34 = vector.broadcast %cst_26 : f32 to vector<32x16xf32>
      %35 = arith.cmpf ogt, %33, %34 : vector<32x16xf32>
      %cst_27 = arith.constant 0.00999999977 : f32
      %36 = vector.broadcast %cst_27 : f32 to vector<32x16xf32>
      %37 = arith.mulf %36, %33 : vector<32x16xf32>
      %38 = arith.select %35, %33, %37 : vector<32x16xi1>, vector<32x16xf32>
      %39 = arith.truncf %38 : vector<32x16xf32> to vector<32x16xbf16>
      %c0_28 = arith.constant 0 : index
      %c0_29 = arith.constant 0 : index
      %40 = vector.load %arg7[%c0_28, %c0_29] : memref<16x8xbf16, #tpu.memory_space<vmem>>, vector<16x8xbf16>
      %cst_30 = arith.constant dense<0.000000e+00> : vector<32x8xf32>
      %41 = tpu.matmul %39, %40, %cst_30 {dimension_numbers = #tpu.dot_dimension_numbers<[1], [0], [0], [1], [0, 0, 1, 1], [], []>} : vector<32x16xbf16>, vector<16x8xbf16>, vector<32x8xf32> -> vector<32x8xf32>
      %c0_31 = arith.constant 0 : index
      %c0_32 = arith.constant 0 : index
      %42 = vector.load %arg8[%c0_31, %c0_32] : memref<1x8xf32, #tpu.memory_space<vmem>>, vector<1x8xf32>
      %43 = vector.broadcast %42 : vector<1x8xf32> to vector<32x8xf32>
      %44 = arith.addf %41, %43 : vector<32x8xf32>
      %cst_33 = arith.constant 0.000000e+00 : f32
      %45 = vector.broadcast %cst_33 : f32 to vector<32x8xf32>
      %46 = arith.cmpf ogt, %44, %45 : vector<32x8xf32>
      %cst_34 = arith.constant 0.00999999977 : f32
      %47 = vector.broadcast %cst_34 : f32 to vector<32x8xf32>
      %48 = arith.mulf %47, %44 : vector<32x8xf32>
      %49 = arith.select %46, %44, %48 : vector<32x8xi1>, vector<32x8xf32>
      %c0_35 = arith.constant 0 : index
      %c0_36 = arith.constant 0 : index
      %50 = vector.load %arg9[%c0_35, %c0_36] : memref<1x8xf32, #tpu.memory_space<vmem>>, vector<1x8xf32>
      %51 = vector.broadcast %50 : vector<1x8xf32> to vector<32x8xf32>
      %52 = arith.mulf %49, %51 : vector<32x8xf32>
      %cst_37 = arith.constant dense<0.000000e+00> : vector<32xf32>
      %53 = vector.multi_reduction <add>, %52, %cst_37 [1] : vector<32x8xf32> to vector<32xf32>
      %54 = vector.shape_cast %53 : vector<32xf32> to vector<32x1xf32>
      %c0_38 = arith.constant 0 : index
      %c0_39 = arith.constant 0 : index
      %55 = vector.load %arg10[%c0_38, %c0_39] : memref<1x1xf32, #tpu.memory_space<vmem>>, vector<1x1xf32>
      %56 = vector.broadcast %55 : vector<1x1xf32> to vector<32x1xf32>
      %57 = arith.addf %54, %56 : vector<32x1xf32>
      %c0_40 = arith.constant 0 : index
      %c0_41 = arith.constant 0 : index
      %58 = vector.load %arg11[%c0_40, %c0_41] : memref<32x1xf32, #tpu.memory_space<vmem>>, vector<32x1xf32>
      tpu.vector_store %arg11[%c0_40, %c0_41], %57 {strides = array<i32>} : memref<32x1xf32, #tpu.memory_space<vmem>>, vector<32x1xf32>,
      %c0_42 = arith.constant 0 : index
      %c0_43 = arith.constant 0 : index
      %59 = vector.load %arg5[%c0_42, %c0_43] : memref<32x16xbf16, #tpu.memory_space<vmem>>, vector<32x16xbf16>
      %60 = math.absf %59 : vector<32x16xbf16>
      %61 = arith.extf %60 : vector<32x16xbf16> to vector<32x16xf32>
      %62 = vector.shape_cast %61 : vector<32x16xf32> to vector<1x32x16xf32>
      %cst_44 = arith.constant dense<0.000000e+00> : vector<1xf32>
      %63 = vector.multi_reduction <add>, %62, %cst_44 [1, 2] : vector<1x32x16xf32> to vector<1xf32>
      %64 = vector.shape_cast %63 : vector<1xf32> to vector<1x1x1xf32>
      %65 = vector.extract %64[0, 0, 0] : f32 from vector<1x1x1xf32>
      %66 = vector.broadcast %65 : f32 to vector<1x1xf32>
      %c0_45 = arith.constant 0 : index
      %c0_46 = arith.constant 0 : index
      %67 = vector.load %arg7[%c0_45, %c0_46] : memref<16x8xbf16, #tpu.memory_space<vmem>>, vector<16x8xbf16>
      %68 = math.absf %67 : vector<16x8xbf16>
      %69 = arith.extf %68 : vector<16x8xbf16> to vector<16x8xf32>
      %70 = vector.shape_cast %69 : vector<16x8xf32> to vector<1x16x8xf32>
      %cst_47 = arith.constant dense<0.000000e+00> : vector<1xf32>
      %71 = vector.multi_reduction <add>, %70, %cst_47 [1, 2] : vector<1x16x8xf32> to vector<1xf32>
      %72 = vector.shape_cast %71 : vector<1xf32> to vector<1x1x1xf32>
      %73 = vector.extract %72[0, 0, 0] : f32 from vector<1x1x1xf32>
      %74 = vector.broadcast %73 : f32 to vector<1x1xf32>
      %75 = arith.addf %66, %74 : vector<1x1xf32>
      %c0_48 = arith.constant 0 : index
      %c0_49 = arith.constant 0 : index
      %76 = vector.load %arg9[%c0_48, %c0_49] : memref<1x8xf32, #tpu.memory_space<vmem>>, vector<1x8xf32>
      %77 = math.absf %76 : vector<1x8xf32>
      %78 = vector.shape_cast %77 : vector<1x8xf32> to vector<1x1x8xf32>
      %cst_50 = arith.constant dense<0.000000e+00> : vector<1xf32>
      %79 = vector.multi_reduction <add>, %78, %cst_50 [1, 2] : vector<1x1x8xf32> to vector<1xf32>
      %80 = vector.shape_cast %79 : vector<1xf32> to vector<1x1x1xf32>
      %81 = vector.extract %80[0, 0, 0] : f32 from vector<1x1x1xf32>
      %82 = vector.broadcast %81 : f32 to vector<1x1xf32>
      %83 = arith.addf %75, %82 : vector<1x1xf32>
      %c0_51 = arith.constant 0 : index
      %c0_52 = arith.constant 0 : index
      %84 = vector.load %arg14[%c0_51, %c0_52] : memref<1x32xf32, #tpu.memory_space<vmem>>, vector<1x32xf32>
      %85 = vector.shape_cast %84 : vector<1x32xf32> to vector<1x1x32xf32>
      %cst_53 = arith.constant dense<0.000000e+00> : vector<1xf32>
      %86 = vector.multi_reduction <add>, %85, %cst_53 [1, 2] : vector<1x1x32xf32> to vector<1xf32>
      %87 = vector.shape_cast %86 : vector<1xf32> to vector<1x1x1xf32>
      %88 = vector.extract %87[0, 0, 0] : f32 from vector<1x1x1xf32>
      %89 = vector.broadcast %88 : f32 to vector<1x1xf32>
      %90 = arith.addf %89, %83 : vector<1x1xf32>
      %cst_54 = arith.constant 1.250000e-01 : f32
      %91 = vector.broadcast %cst_54 : f32 to vector<1x1xf32>
      %92 = arith.mulf %90, %91 : vector<1x1xf32>
      %c0_55 = arith.constant 0 : index
      %c0_56 = arith.constant 0 : index
      %93 = vector.load %arg12[%c0_55, %c0_56] : memref<1x1xf32, #tpu.memory_space<vmem>>, vector<1x1xf32>
      tpu.vector_store %arg12[%c0_55, %c0_56], %92 {strides = array<i32>} : memref<1x1xf32, #tpu.memory_space<vmem>>, vector<1x1xf32>,
    } else {
    }
    return
  }
  func.func @transform_0(%arg0: i32, %arg1: i32) -> (i32, i32) {
    %c0_i32 = arith.constant 0 : i32
    return %arg0, %arg1 : i32, i32
  }
  func.func @transform_1(%arg0: i32, %arg1: i32) -> (i32, i32) {
    %c0_i32 = arith.constant 0 : i32
    %c0_i32_0 = arith.constant 0 : i32
    return %arg1, %c0_i32 : i32, i32
  }
  func.func @transform_2(%arg0: i32, %arg1: i32) -> (i32, i32) {
    %c0_i32 = arith.constant 0 : i32
    %c0_i32_0 = arith.constant 0 : i32
    %c0_i32_1 = arith.constant 0 : i32
    return %c0_i32, %c0_i32_0 : i32, i32
  }
  func.func @transform_3(%arg0: i32, %arg1: i32) -> (i32, i32) {
    %c0_i32 = arith.constant 0 : i32
    %c0_i32_0 = arith.constant 0 : i32
    %c0_i32_1 = arith.constant 0 : i32
    return %c0_i32, %c0_i32_0 : i32, i32
  }
  func.func @transform_4(%arg0: i32, %arg1: i32) -> (i32, i32) {
    %c0_i32 = arith.constant 0 : i32
    %c0_i32_0 = arith.constant 0 : i32
    %c0_i32_1 = arith.constant 0 : i32
    return %c0_i32, %c0_i32_0 : i32, i32
  }
  func.func @transform_5(%arg0: i32, %arg1: i32) -> (i32, i32) {
    %c0_i32 = arith.constant 0 : i32
    %c0_i32_0 = arith.constant 0 : i32
    %c0_i32_1 = arith.constant 0 : i32
    return %c0_i32, %c0_i32_0 : i32, i32
  }
  func.func @transform_6(%arg0: i32, %arg1: i32) -> (i32, i32) {
    %c0_i32 = arith.constant 0 : i32
    %c0_i32_0 = arith.constant 0 : i32
    %c0_i32_1 = arith.constant 0 : i32
    return %c0_i32, %c0_i32_0 : i32, i32
  }
  func.func @transform_7(%arg0: i32, %arg1: i32) -> (i32, i32) {
    %c0_i32 = arith.constant 0 : i32
    %c0_i32_0 = arith.constant 0 : i32
    %c0_i32_1 = arith.constant 0 : i32
    return %c0_i32, %c0_i32_0 : i32, i32
  }
  func.func @transform_8(%arg0: i32, %arg1: i32) -> (i32, i32) {
    %c0_i32 = arith.constant 0 : i32
    %c0_i32_0 = arith.constant 0 : i32
    %c0_i32_1 = arith.constant 0 : i32
    return %c0_i32, %c0_i32_0 : i32, i32
  }
  func.func @transform_9(%arg0: i32, %arg1: i32) -> (i32, i32) {
    %c0_i32 = arith.constant 0 : i32
    %c0_i32_0 = arith.constant 0 : i32
    return %arg0, %c0_i32 : i32, i32
  }
  func.func @transform_10(%arg0: i32, %arg1: i32) -> (i32, i32) {
    %c0_i32 = arith.constant 0 : i32
    %c0_i32_0 = arith.constant 0 : i32
    %c0_i32_1 = arith.constant 0 : i32
    return %c0_i32, %c0_i32_0 : i32, i32
  }
}

</mosaic_0001>

<bundles_post_ra>
// kernel: tpu_custom_call.1
= control target key start
LH: loop header
LB: loop body
LE: loop exit
PB: predicated region body
PF: predicated region fallthrough
CT: control target
= control target key end

     0   :  { %s3226_s0 = inlined_call_operand.vmem [shape: bf16[32,1024], index: 0, kind: input, shape index: {}]   ;;  %s3227_s1 = inlined_call_operand.vmem [shape: bf16[1024,32], index: 1, kind: input, shape index: {}]   ;;  %s3228_s2 = inlined_call_operand.vmem [shape: f32[1,32], index: 2, kind: input, shape index: {}]   ;;  %s3229_s3 = inlined_call_operand.vmem [shape: bf16[32,16], index: 3, kind: input, shape index: {}]   ;;  %s3230_s4 = inlined_call_operand.vmem [shape: f32[1,16], index: 4, kind: input, shape index: {}]   ;;  %s3231_s5 = inlined_call_operand.vmem [shape: bf16[16,8], index: 5, kind: input, shape index: {}]   ;;  %s3232_s6 = inlined_call_operand.vmem [shape: f32[1,8], index: 6, kind: input, shape index: {}]   ;;  %s3233_s7 = inlined_call_operand.vmem [shape: f32[1,8], index: 7, kind: input, shape index: {}]   ;;  %s3234_s8 = inlined_call_operand.<no memory space> [shape: f32[1,1], index: 8, kind: input, shape index: {}]   ;;  %s3235_s9 = inlined_call_operand.vmem [shape: f32[32,1], index: 9, kind: output, shape index: {0}]   ;;  %s3236_s10 = inlined_call_operand.hbm [shape: f32[1,1], index: 10, kind: output, shape index: {1}]  }
   0x1   :  { %v16_v0 = vstv %s3234_s8 }
   0x2   :  { %17 = vst [vmem:[#allocation4] sm:$0x1] %v16_v0 }
   0x3   :  { %v2128_v1 = vld [vmem:[%s3227_s1 + $0x40] sm:$0xf]  ;;  %v2133_v2 = vld [vmem:[%s3227_s1 + $0x44] sm:$0xf]  ;;  %v2170_v15 = vld [vmem:[%s3227_s1 + $0x48] sm:$0xf] }
   0x4   :  { %v1756_v3 = vcombine.low %v2128_v1, %v2133_v2  ;;  %v2140_v4 = vld [vmem:[%s3227_s1 + $0xc0] sm:$0xf]  ;;  %v2145_v5 = vld [vmem:[%s3227_s1 + $0xc4] sm:$0xf]  ;;  %v2175_v16 = vld [vmem:[%s3227_s1 + $0x4c] sm:$0xf] }
   0x5   :  { %v49_v6 = vld [vmem:[%s3227_s1] sm:$0xf]  ;;  %v1772_v7 = vcombine.low %v2140_v4, %v2145_v5  ;;  %v50_v8 = vld [vmem:[%s3227_s1 + $0x4] sm:$0xf]  ;;  %v2180_v19 = vld [vmem:[%s3227_s1 + $0xc8] sm:$0xf]  ;;  %v1757_v20 = vcombine.low %v2170_v15, %v2175_v16 }
   0x6   :  { %1824 = vmatprep.subr.bf16.mxu0 %v1756_v3  ;;  %v2158_v9 = vld [vmem:[%s3227_s1 + $0x80] sm:$0xf]  ;;  %v1748_v10 = vcombine.low %v49_v6, %v50_v8  ;;  %v867_v11 = vand.u32 2147450879, %v49_v6  ;;  %v868_v12 = vand.u32 2147450879, %v50_v8 }
   0x7   :  { %v2163_v13 = vld [vmem:[%s3227_s1 + $0x84] sm:$0xf]  ;;  %1852 = vmatprep.subr.bf16.mxu1 %v1772_v7  ;;  %vm42_vm0 = vcmask 261120   ;;  %v2189_v23 = vld [vmem:[%s3227_s1 + $0xcc] sm:$0xf] }
   0x8   :  { %v1764_v14 = vcombine.low %v2158_v9, %v2163_v13  ;;  %1825 = vmatpush3.bf16.msra.mxu0 %v1748_v10  ;;  %v995_v17 = vunpack.c.l.bf16 %v867_v11  ;;  %v996_v18 = vunpack.c.l.bf16 %v868_v12  ;;  %v1773_v25 = vcombine.low %v2180_v19, %v2189_v23  ;;  %v51_v26 = vld [vmem:[%s3227_s1 + $0x8] sm:$0xf]  ;;  %v52_v27 = vld [vmem:[%s3227_s1 + $0xc] sm:$0xf]  ;;  %v2212_v33 = vld [vmem:[%s3227_s1 + $0x50] sm:$0xf] }
   0x9   :  { %1826 = vmatprep.subr.bf16.mxu0 %v1757_v20  ;;  %v2202_v28 = vld [vmem:[%s3227_s1 + $0x88] sm:$0xf]  ;;  %v1749_v29 = vcombine.low %v51_v26, %v52_v27  ;;  %v869_v30 = vand.u32 2147450879, %v51_v26  ;;  %v2207_v31 = vld [vmem:[%s3227_s1 + $0x8c] sm:$0xf] }
   0xa   :  { %1853 = vmatpush3.bf16.msra.mxu1 %v1764_v14  ;;  %v1123_v21 = vsel %vm42_vm0, %v995_v17, 0.0  ;;  %v1124_v22 = vsel %vm42_vm0, %v996_v18, 0.0  ;;  %v870_v32 = vand.u32 2147450879, %v52_v27  ;;  %v1765_v35 = vcombine.low %v2202_v28, %v2207_v31  ;;  %v2219_v36 = vld [vmem:[%s3227_s1 + $0x54] sm:$0xf] }
   0xb   :  { %v1125_v24 = vadd.f32 %v1124_v22, %v1123_v21  ;;  %1854 = vmatprep.subr.bf16.mxu1 %v1773_v25  ;;  %v997_v34 = vunpack.c.l.bf16 %v869_v30  ;;  %v1758_v38 = vcombine.low %v2212_v33, %v2219_v36  ;;  %v2226_v39 = vld [vmem:[%s3227_s1 + $0xd0] sm:$0xf]  ;;  %v2231_v40 = vld [vmem:[%s3227_s1 + $0xd4] sm:$0xf]  ;;  %v2256_v53 = vld [vmem:[%s3227_s1 + $0x58] sm:$0xf] }
   0xc   :  { %1827 = vmatpush3.bf16.msra.mxu0 %v1749_v29  ;;  %v998_v37 = vunpack.c.l.bf16 %v870_v32  ;;  %v53_v42 = vld [vmem:[%s3227_s1 + $0x10] sm:$0xf]  ;;  %v1774_v45 = vcombine.low %v2226_v39, %v2231_v40  ;;  %v54_v46 = vld [vmem:[%s3227_s1 + $0x14] sm:$0xf]  ;;  %v2263_v55 = vld [vmem:[%s3227_s1 + $0x5c] sm:$0xf] }
   0xd   :  { %v1126_v41 = vsel %vm42_vm0, %v997_v34, 0.0  ;;  %1828 = vmatprep.subr.bf16.mxu0 %v1758_v38  ;;  %v2246_v47 = vld [vmem:[%s3227_s1 + $0x90] sm:$0xf]  ;;  %v1750_v49 = vcombine.low %v53_v42, %v54_v46  ;;  %v2251_v50 = vld [vmem:[%s3227_s1 + $0x94] sm:$0xf]  ;;  %v1759_v59 = vcombine.low %v2256_v53, %v2263_v55 }
   0xe   :  { %1855 = vmatpush3.bf16.msra.mxu1 %v1765_v35  ;;  %v1127_v43 = vadd.f32 %v1126_v41, %v1125_v24  ;;  %v1128_v44 = vsel %vm42_vm0, %v998_v37, 0.0  ;;  %v871_v51 = vand.u32 2147450879, %v53_v42  ;;  %v872_v52 = vand.u32 2147450879, %v54_v46 }
   0xf   :  { %1856 = vmatprep.subr.bf16.mxu1 %v1774_v45  ;;  %v1766_v54 = vcombine.low %v2246_v47, %v2251_v50  ;;  %v2268_v58 = vld [vmem:[%s3227_s1 + $0xd8] sm:$0xf]  ;;  %v2275_v60 = vld [vmem:[%s3227_s1 + $0xdc] sm:$0xf]  ;;  %v2300_v17 = vld [vmem:[%s3227_s1 + $0x60] sm:$0xf] }
  0x10   :  { %v1129_v48 = vadd.f32 %v1128_v44, %v1127_v43  ;;  %1829 = vmatpush3.bf16.msra.mxu0 %v1750_v49  ;;  %v999_v56 = vunpack.c.l.bf16 %v871_v51  ;;  %v1000_v57 = vunpack.c.l.bf16 %v872_v52  ;;  %v55_v63 = vld [vmem:[%s3227_s1 + $0x18] sm:$0xf]  ;;  %v1775_v3 = vcombine.low %v2268_v58, %v2275_v60  ;;  %v56_v6 = vld [vmem:[%s3227_s1 + $0x1c] sm:$0xf]  ;;  %v2307_v21 = vld [vmem:[%s3227_s1 + $0x64] sm:$0xf] }
  0x11   :  { %1830 = vmatprep.subr.bf16.mxu0 %v1759_v59  ;;  %v2290_v7 = vld [vmem:[%s3227_s1 + $0x98] sm:$0xf]  ;;  %v1751_v10 = vcombine.low %v55_v63, %v56_v6  ;;  %v873_v11 = vand.u32 2147450879, %v55_v63  ;;  %v2295_v12 = vld [vmem:[%s3227_s1 + $0x9c] sm:$0xf]  ;;  %v1760_v24 = vcombine.low %v2300_v17, %v2307_v21 }
  0x12   :  { %1857 = vmatpush3.bf16.msra.mxu1 %v1766_v54  ;;  %v1130_v61 = vsel %vm42_vm0, %v999_v56, 0.0  ;;  %v1132_v62 = vsel %vm42_vm0, %v1000_v57, 0.0  ;;  %v874_v14 = vand.u32 2147450879, %v56_v6  ;;  %v1767_v20 = vcombine.low %v2290_v7, %v2295_v12  ;;  %v2314_v25 = vld [vmem:[%s3227_s1 + $0xe0] sm:$0xf] }
  0x13   :  { %v1131_v0 = vadd.f32 %v1130_v61, %v1129_v48  ;;  %1858 = vmatprep.subr.bf16.mxu1 %v1775_v3  ;;  %v1001_v18 = vunpack.c.l.bf16 %v873_v11  ;;  %v2319_v26 = vld [vmem:[%s3227_s1 + $0xe4] sm:$0xf]  ;;  %v57_v29 = vld [vmem:[%s3227_s1 + $0x20] sm:$0xf]  ;;  %v2344_v45 = vld [vmem:[%s3227_s1 + $0x68] sm:$0xf] }
  0x14   :  { %1831 = vmatpush3.bf16.msra.mxu0 %v1751_v10  ;;  %v1002_v22 = vunpack.c.l.bf16 %v874_v14  ;;  %v1776_v34 = vcombine.low %v2314_v25, %v2319_v26  ;;  %v58_v35 = vld [vmem:[%s3227_s1 + $0x24] sm:$0xf]  ;;  %v2334_v37 = vld [vmem:[%s3227_s1 + $0xa0] sm:$0xf]  ;;  %v875_v43 = vand.u32 2147450879, %v57_v29 }
  0x15   :  { %v1133_v8 = vadd.f32 %v1132_v62, %v1131_v0  ;;  %v1134_v27 = vsel %vm42_vm0, %v1001_v18, 0.0  ;;  %1832 = vmatprep.subr.bf16.mxu0 %v1760_v24  ;;  %v1752_v41 = vcombine.low %v57_v29, %v58_v35  ;;  %v2339_v42 = vld [vmem:[%s3227_s1 + $0xa4] sm:$0xf]  ;;  %v876_v44 = vand.u32 2147450879, %v58_v35 }
  0x16   :  { %1859 = vmatpush3.bf16.msra.mxu1 %v1767_v20  ;;  %v1136_v32 = vsel %vm42_vm0, %v1002_v22, 0.0  ;;  %v1768_v46 = vcombine.low %v2334_v37, %v2339_v42  ;;  %v2351_v48 = vld [vmem:[%s3227_s1 + $0x6c] sm:$0xf]  ;;  %v1003_v49 = vunpack.c.l.bf16 %v875_v43  ;;  %v2356_v52 = vld [vmem:[%s3227_s1 + $0xe8] sm:$0xf] }
  0x17   :  { %v1135_v30 = vadd.f32 %v1134_v27, %v1133_v8  ;;  %1860 = vmatprep.subr.bf16.mxu1 %v1776_v34  ;;  %v1004_v51 = vunpack.c.l.bf16 %v876_v44  ;;  %v1761_v54 = vcombine.low %v2344_v45, %v2351_v48  ;;  %v2363_v56 = vld [vmem:[%s3227_s1 + $0xec] sm:$0xf]  ;;  %v59_v61 = vld [vmem:[%s3227_s1 + $0x28] sm:$0xf]  ;;  %v2388_v18 = vld [vmem:[%s3227_s1 + $0x70] sm:$0xf] }
  0x18   :  { %1833 = vmatpush3.bf16.msra.mxu0 %v1752_v41  ;;  %3271 = vst [vmem:[#allocation8_spill] sm:$0xff] %v2363_v56  ;;  %v1138_v57 = vsel %vm42_vm0, %v1003_v49, 0.0  ;;  %v1777_v63 = vcombine.low %v2356_v52, %v2363_v56  ;;  %v60_v0 = vld [vmem:[%s3227_s1 + $0x2c] sm:$0xf]  ;;  %v2378_v3 = vld [vmem:[%s3227_s1 + $0xa8] sm:$0xf] }
  0x19   :  { %v1137_v38 = vadd.f32 %v1136_v32, %v1135_v30  ;;  %v1140_v59 = vsel %vm42_vm0, %v1004_v51, 0.0  ;;  %1834 = vmatprep.subr.bf16.mxu0 %v1761_v54  ;;  %v1753_v8 = vcombine.low %v59_v61, %v60_v0  ;;  %v877_v10 = vand.u32 2147450879, %v59_v61  ;;  %v2383_v11 = vld [vmem:[%s3227_s1 + $0xac] sm:$0xf] }
  0x1a   :  { %1861 = vmatpush3.bf16.msra.mxu1 %v1768_v46  ;;  %v878_v14 = vand.u32 2147450879, %v60_v0  ;;  %v1769_v22 = vcombine.low %v2378_v3, %v2383_v11  ;;  %v2395_v24 = vld [vmem:[%s3227_s1 + $0x74] sm:$0xf]  ;;  %v2402_v30 = vld [vmem:[%s3227_s1 + $0xf0] sm:$0xf] }
  0x1b   :  { %v1139_v62 = vadd.f32 %v1138_v57, %v1137_v38  ;;  %1862 = vmatprep.subr.bf16.mxu1 %v1777_v63  ;;  %v1005_v20 = vunpack.c.l.bf16 %v877_v10  ;;  %v1762_v29 = vcombine.low %v2388_v18, %v2395_v24  ;;  %3272 = vst [vmem:[#allocation9_spill] sm:$0xff] %v2402_v30  ;;  %v2407_v32 = vld [vmem:[%s3227_s1 + $0xf4] sm:$0xf]  ;;  %v61_v35 = vld [vmem:[%s3227_s1 + $0x30] sm:$0xf] }
  0x1c   :  { %1835 = vmatpush3.bf16.msra.mxu0 %v1753_v8  ;;  %v1006_v27 = vunpack.c.l.bf16 %v878_v14  ;;  %3273 = vst [vmem:[#allocation10_spill] sm:$0xff] %v2407_v32  ;;  %v1778_v43 = vcombine.low %v2402_v30, %v2407_v32  ;;  %v62_v44 = vld [vmem:[%s3227_s1 + $0x34] sm:$0xf]  ;;  %v2422_v46 = vld [vmem:[%s3227_s1 + $0xb0] sm:$0xf] }
  0x1d   :  { %v1141_v6 = vadd.f32 %v1140_v59, %v1139_v62  ;;  %v1142_v34 = vsel %vm42_vm0, %v1005_v20, 0.0  ;;  %1836 = vmatprep.subr.bf16.mxu0 %v1762_v29  ;;  %v1754_v51 = vcombine.low %v61_v35, %v62_v44  ;;  %v2427_v54 = vld [vmem:[%s3227_s1 + $0xb4] sm:$0xf]  ;;  %v879_v57 = vand.u32 2147450879, %v61_v35 }
  0x1e   :  { %1863 = vmatpush3.bf16.msra.mxu1 %v1769_v22  ;;  %v1144_v41 = vsel %vm42_vm0, %v1006_v27, 0.0  ;;  %v880_v59 = vand.u32 2147450879, %v62_v44  ;;  %v2432_v61 = vld [vmem:[%s3227_s1 + $0x78] sm:$0xf]  ;;  %v1770_v62 = vcombine.low %v2422_v46, %v2427_v54  ;;  %v185_v44 = vld [vmem:[%s3226_s0 + $0x20] sm:$0xff] }
  0x1f   :  { %v1143_v38 = vadd.f32 %v1142_v34, %v1141_v6  ;;  %1864 = vmatprep.subr.bf16.mxu1 %v1778_v43  ;;  %v2439_v63 = vld [vmem:[%s3227_s1 + $0x7c] sm:$0xf]  ;;  %v1007_v0 = vunpack.c.l.bf16 %v879_v57  ;;  %v2444_v8 = vld [vmem:[%s3227_s1 + $0xf8] sm:$0xf]  ;;  %v883_v29 = vand.u32 2147450879, %v2128_v1 }
  0x20   :  { %1837 = vmatpush3.bf16.msra.mxu0 %v1754_v51  ;;  %v1008_v6 = vunpack.c.l.bf16 %v880_v59  ;;  %3274 = vst [vmem:[#allocation11_spill] sm:$0xff] %v2444_v8  ;;  %v1763_v10 = vcombine.low %v2432_v61, %v2439_v63  ;;  %v2451_v14 = vld [vmem:[%s3227_s1 + $0xfc] sm:$0xf]  ;;  %v63_v27 = vld [vmem:[%s3227_s1 + $0x38] sm:$0xf]  ;;  %v181_v1 = vld [vmem:[%s3226_s0] sm:$0xff] }
  0x21   :  { %v1145_v49 = vadd.f32 %v1144_v41, %v1143_v38  ;;  %3275 = vst [vmem:[#allocation12_spill] sm:$0xff] %v2451_v14  ;;  %v1146_v20 = vsel %vm42_vm0, %v1007_v0, 0.0  ;;  %v1779_v35 = vcombine.low %v2444_v8, %v2451_v14  ;;  %v64_v38 = vld [vmem:[%s3227_s1 + $0x3c] sm:$0xf]  ;;  %v884_v41 = vand.u32 2147450879, %v2133_v2 }
  0x22   :  { %1865 = vmatpush3.bf16.msra.mxu1 %v1770_v62  ;;  %v1148_v22 = vsel %vm42_vm0, %v1008_v6, 0.0  ;;  %1838 = vmatprep.subr.bf16.mxu0 %v1763_v10  ;;  %v2468_v43 = vld [vmem:[%s3227_s1 + $0xb8] sm:$0xf]  ;;  %v1755_v57 = vcombine.low %v63_v27, %v64_v38  ;;  %v881_v59 = vand.u32 2147450879, %v63_v27  ;;  %v1011_v0 = vunpack.c.l.bf16 %v883_v29 }
  0x23   :  { %v1147_v34 = vadd.f32 %v1146_v20, %v1145_v49  ;;  %v885_v49 = vand.u32 2147450879, %v2170_v15  ;;  %1866 = vmatprep.subr.bf16.mxu1 %v1779_v35  ;;  %v2480_v2 = vld [vmem:[%s3227_s1 + $0xbc] sm:$0xf]  ;;  %v882_v62 = vand.u32 2147450879, %v64_v38  ;;  %v1012_v38 = vunpack.c.l.bf16 %v884_v41 }
  0x24   :  { %1839 = vmatpush3.bf16.msra.mxu0 %v1755_v57  ;;  %v1009_v6 = vunpack.c.l.bf16 %v881_v59  ;;  %v1771_v10 = vcombine.low %v2468_v43, %v2480_v2  ;;  %v182_v15 = vld [vmem:[%s3226_s0 + $0x8] sm:$0xff]  ;;  %v2494_v29 = vld [vmem:[%s3227_s1 + $0x140] sm:$0xf]  ;;  %v2499_v35 = vld [vmem:[%s3227_s1 + $0x144] sm:$0xf]  ;;  %v1733_v14 = vcombine.high %v181_v1, %v185_v44 }
  0x25   :  { %v1149_v51 = vadd.f32 %v1148_v22, %v1147_v34  ;;  %v186_v20 = vld [vmem:[%s3226_s0 + $0x28] sm:$0xff]  ;;  %v886_v22 = vand.u32 2147450879, %v2175_v16  ;;  %v1010_v27 = vunpack.c.l.bf16 %v882_v62  ;;  %v1732_v34 = vcombine.low %v181_v1, %v185_v44  ;;  %v161_v16 = vld [vmem:[%s3227_s1 + $0x1c0] sm:$0xf] }
  0x26   :  { %v1013_v57 = vunpack.c.l.bf16 %v885_v49  ;;  %v1150_v59 = vsel %vm42_vm0, %v1009_v6, 0.0  ;;  %1867 = vmatpush3.bf16.msra.mxu1 %v1771_v10  ;;  %v162_v62 = vld [vmem:[%s3227_s1 + $0x1c4] sm:$0xf]  ;;  %v1734_v30 = vcombine.low %v182_v15, %v186_v20  ;;  %v1735_v56 = vcombine.high %v182_v15, %v186_v20  ;;  %v2512_v41 = vld [vmem:[%s3227_s1 + $0x100] sm:$0xf]  ;;  %693 = vmatprep.mubr.bf16.mxu0 %v1733_v14 }
  0x27   :  { %v1151_v8 = vadd.f32 %v1150_v59, %v1149_v51  ;;  %v1152_v32 = vsel %vm42_vm0, %v1010_v27, 0.0  ;;  %v2517_v1 = vld [vmem:[%s3227_s1 + $0x104] sm:$0xf]  ;;  %v1154_v44 = vsel %vm42_vm0, %v1011_v0, 0.0  ;;  %v887_v49 = vand.u32 2147450879, %v2212_v33  ;;  %694 = vmatmul.mubr.bf16.vlgmr.msra.gmra.mrb[0].mxu0 %v1732_v34 }
  0x28   :  { %v1788_v51 = vcombine.low %v2494_v29, %v2499_v35  ;;  %742 = vmatprep.mubr.bf16.mxu1 %v1735_v56  ;;  %v1804_v10 = vcombine.low %v161_v16, %v162_v62  ;;  %v2526_v15 = vld [vmem:[%s3227_s1 + $0x180] sm:$0xf]  ;;  %v2531_v20 = vld [vmem:[%s3227_s1 + $0x184] sm:$0xf]  ;;  %v1156_v33 = vsel %vm42_vm0, %v1012_v38, 0.0  ;;  %v1014_v14 = vunpack.c.l.bf16 %v886_v22 }
  0x29   :  { %v1153_v6 = vadd.f32 %v1152_v32, %v1151_v8  ;;  %3276 = vst [vmem:[#allocation13_spill] sm:$0xff] %v2526_v15  ;;  %3277 = vst [vmem:[#allocation14_spill] sm:$0xff] %v2531_v20  ;;  %v888_v0 = vand.u32 2147450879, %v2219_v36  ;;  %743 = vmatmul.mubr.bf16.vlgmr.msra.gmra.mrb[0].mxu1 %v1734_v30  ;;  %v1780_v56 = vcombine.low %v2512_v41, %v2517_v1  ;;  %v1158_v32 = vsel %vm42_vm0, %v1013_v57, 0.0 }
  0x2a   :  { %1880 = vmatprep.subr.bf16.mxu0 %v1788_v51  ;;  %1908 = vmatprep.subr.bf16.mxu1 %v1804_v10  ;;  %v1015_v27 = vunpack.c.l.bf16 %v887_v49  ;;  %v889_v34 = vand.u32 2147450879, %v2256_v53  ;;  %v1796_v59 = vcombine.low %v2526_v15, %v2531_v20  ;;  %v2544_v36 = vld [vmem:[%s3227_s1 + $0x148] sm:$0xf]  ;;  %v2549_v30 = vld [vmem:[%s3227_s1 + $0x14c] sm:$0xf] }
  0x2b   :  { %v1155_v8 = vadd.f32 %v1154_v44, %v1153_v6  ;;  %1881 = vmatpush3.bf16.msra.mxu0 %v1780_v56  ;;  %v163_v38 = vld [vmem:[%s3227_s1 + $0x1c8] sm:$0xf]  ;;  %v164_v53 = vld [vmem:[%s3227_s1 + $0x1cc] sm:$0xf]  ;;  %v1160_v57 = vsel %vm42_vm0, %v1014_v14, 0.0  ;;  %v1016_v16 = vunpack.c.l.bf16 %v888_v0  ;;  %v1789_v49 = vcombine.low %v2544_v36, %v2549_v30 }
  0x2c   :  { %v890_v62 = vand.u32 2147450879, %v2263_v55  ;;  %1909 = vmatpush3.bf16.msra.mxu1 %v1796_v59  ;;  %v2564_v51 = vld [vmem:[%s3227_s1 + $0x108] sm:$0xf]  ;;  %v2569_v6 = vld [vmem:[%s3227_s1 + $0x10c] sm:$0xf]  ;;  %v1805_v14 = vcombine.low %v163_v38, %v164_v53 }
  0x2d   :  { %v1157_v22 = vadd.f32 %v1156_v33, %v1155_v8  ;;  %v1162_v10 = vsel %vm42_vm0, %v1015_v27, 0.0  ;;  %v1017_v33 = vunpack.c.l.bf16 %v889_v34  ;;  %v891_v55 = vand.u32 2147450879, %v2300_v17  ;;  %1882 = vmatprep.subr.bf16.mxu0 %v1789_v49  ;;  %v2576_v56 = vld [vmem:[%s3227_s1 + $0x188] sm:$0xf] }
  0x2e   :  { %3278 = vst [vmem:[#allocation15_spill] sm:$0xff] %v2576_v56  ;;  %v1164_v8 = vsel %vm42_vm0, %v1016_v16, 0.0  ;;  %v1018_v59 = vunpack.c.l.bf16 %v890_v62  ;;  %v892_v27 = vand.u32 2147450879, %v2307_v21  ;;  %1910 = vmatprep.subr.bf16.mxu1 %v1805_v14  ;;  %v1781_v17 = vcombine.low %v2564_v51, %v2569_v6  ;;  %v2595_v38 = vld [vmem:[%s3227_s1 + $0x154] sm:$0xf] }
  0x2f   :  { %v1159_v44 = vadd.f32 %v1158_v32, %v1157_v22  ;;  %v2581_v32 = vld [vmem:[%s3227_s1 + $0x18c] sm:$0xf]  ;;  %v2590_v22 = vld [vmem:[%s3227_s1 + $0x150] sm:$0xf]  ;;  %v1166_v53 = vsel %vm42_vm0, %v1017_v33, 0.0 }
  0x30   :  { %3279 = vst [vmem:[#allocation16_spill] sm:$0xff] %v2581_v32  ;;  %v893_v21 = vand.u32 2147450879, %v2344_v45  ;;  %1883 = vmatpush3.bf16.msra.mxu0 %v1781_v17  ;;  %v1797_v16 = vcombine.low %v2576_v56, %v2581_v32  ;;  %v166_v49 = vld [vmem:[%s3227_s1 + $0x1d4] sm:$0xf]  ;;  %v1020_v33 = vunpack.c.l.bf16 %v892_v27  ;;  %v1790_v45 = vcombine.low %v2590_v22, %v2595_v38 }
  0x31   :  { %v1161_v0 = vadd.f32 %v1160_v57, %v1159_v44  ;;  %v1019_v57 = vunpack.c.l.bf16 %v891_v55  ;;  %v2604_v44 = vld [vmem:[%s3227_s1 + $0x1d0] sm:$0xf]  ;;  %v894_v55 = vand.u32 2147450879, %v2351_v48  ;;  %v895_v48 = vand.u32 2147450879, %v2388_v18 }
  0x32   :  { %3280 = vst [vmem:[#allocation17_spill] sm:$0xff] %v2604_v44  ;;  %1911 = vmatpush3.bf16.msra.mxu1 %v1797_v16  ;;  %v1021_v27 = vunpack.c.l.bf16 %v893_v21  ;;  %1884 = vmatprep.subr.bf16.mxu0 %v1790_v45  ;;  %v1806_v17 = vcombine.low %v2604_v44, %v166_v49  ;;  %v2634_v16 = vld [vmem:[%s3227_s1 + $0x194] sm:$0xf]  ;;  %v896_v21 = vand.u32 2147450879, %v2395_v24 }
  0x33   :  { %v1163_v34 = vadd.f32 %v1162_v10, %v1161_v0  ;;  %v1168_v10 = vsel %vm42_vm0, %v1018_v59, 0.0  ;;  %v2616_v0 = vld [vmem:[%s3227_s1 + $0x110] sm:$0xf]  ;;  %v1170_v59 = vsel %vm42_vm0, %v1019_v57, 0.0  ;;  %3282 = vst [vmem:[#allocation19_spill] sm:$0xff] %v2634_v16  ;;  %v1022_v57 = vunpack.c.l.bf16 %v894_v55 }
  0x34   :  { %1912 = vmatprep.subr.bf16.mxu1 %v1806_v17  ;;  %v2648_v45 = vld [vmem:[%s3227_s1 + $0x15c] sm:$0xf]  ;;  %v1023_v55 = vunpack.c.l.bf16 %v895_v48  ;;  %v897_v24 = vand.u32 2147450879, %v2432_v61  ;;  %v2657_v17 = vld [vmem:[%s3227_s1 + $0x1d8] sm:$0xf]  ;;  %v1024_v48 = vunpack.c.l.bf16 %v896_v21 }
  0x35   :  { %v1165_v62 = vadd.f32 %v1164_v8, %v1163_v34  ;;  %v2621_v8 = vld [vmem:[%s3227_s1 + $0x114] sm:$0xf]  ;;  %3283 = vst [vmem:[#allocation20_spill] sm:$0xff] %v2657_v17  ;;  %v898_v61 = vand.u32 2147450879, %v2439_v63 }
  0x36   :  { %v1782_v18 = vcombine.low %v2616_v0, %v2621_v8  ;;  %v2672_v44 = vld [vmem:[%s3227_s1 + $0x118] sm:$0xf]  ;;  %v1025_v63 = vunpack.c.l.bf16 %v897_v24 }
  0x37   :  { %v1167_v14 = vadd.f32 %v1166_v53, %v1165_v62  ;;  %v2629_v53 = vld [vmem:[%s3227_s1 + $0x190] sm:$0xf]  ;;  %v1172_v62 = vsel %vm42_vm0, %v1020_v33, 0.0  ;;  %v1174_v33 = vsel %vm42_vm0, %v1021_v27, 0.0  ;;  %v1176_v27 = vsel %vm42_vm0, %v1022_v57, 0.0 }
  0x38   :  { %3281 = vst [vmem:[#allocation18_spill] sm:$0xff] %v2629_v53  ;;  %1885 = vmatpush3.bf16.msra.mxu0 %v1782_v18  ;;  %v1178_v57 = vsel %vm42_vm0, %v1023_v55, 0.0  ;;  %v1180_v55 = vsel %vm42_vm0, %v1024_v48, 0.0  ;;  %v1026_v24 = vunpack.c.l.bf16 %v898_v61  ;;  %v1182_v48 = vsel %vm42_vm0, %v1025_v63, 0.0 }
  0x39   :  { %v1169_v34 = vadd.f32 %v1168_v10, %v1167_v14  ;;  %v2643_v10 = vld [vmem:[%s3227_s1 + $0x158] sm:$0xf]  ;;  %v1798_v14 = vcombine.low %v2629_v53, %v2634_v16  ;;  %v2677_v16 = vld [vmem:[%s3227_s1 + $0x11c] sm:$0xf]  ;;  %v2748_v53 = vld [vmem:[%s3227_s1 + $0x1a4] sm:$0xf] }
  0x3a   :  { %v1791_v18 = vcombine.low %v2643_v10, %v2648_v45  ;;  %v1184_v63 = vsel %vm42_vm0, %v1026_v24, 0.0  ;;  %v904_v24 = vand.u32 2147450879, %v2251_v50  ;;  %3290 = vst [vmem:[#allocation27_spill] sm:$0xff] %v2748_v53 }
  0x3b   :  { %v1171_v49 = vadd.f32 %v1170_v59, %v1169_v34  ;;  %v2662_v34 = vld [vmem:[%s3227_s1 + $0x1dc] sm:$0xf]  ;;  %1913 = vmatpush3.bf16.msra.mxu1 %v1798_v14 }
  0x3c   :  { %3284 = vst [vmem:[#allocation21_spill] sm:$0xff] %v2662_v34  ;;  %1886 = vmatprep.subr.bf16.mxu0 %v1791_v18  ;;  %v1807_v21 = vcombine.low %v2657_v17, %v2662_v34  ;;  %v1783_v18 = vcombine.low %v2672_v44, %v2677_v16  ;;  %v2700_v17 = vld [vmem:[%s3227_s1 + $0x160] sm:$0xf] }
  0x3d   :  { %v1173_v59 = vadd.f32 %v1172_v62, %v1171_v49  ;;  %v899_v62 = vand.u32 2147450879, %v2158_v9  ;;  %v2685_v9 = vld [vmem:[%s3227_s1 + $0x198] sm:$0xf] }
  0x3e   :  { %3285 = vst [vmem:[#allocation22_spill] sm:$0xff] %v2685_v9  ;;  %1914 = vmatprep.subr.bf16.mxu1 %v1807_v21  ;;  %1887 = vmatpush3.bf16.msra.mxu0 %v1783_v18  ;;  %v2719_v21 = vld [vmem:[%s3227_s1 + $0x1e4] sm:$0xf] }
  0x3f   :  { %v1175_v49 = vadd.f32 %v1174_v33, %v1173_v59  ;;  %v2690_v33 = vld [vmem:[%s3227_s1 + $0x19c] sm:$0xf]  ;;  %v900_v59 = vand.u32 2147450879, %v2163_v13  ;;  %v2705_v13 = vld [vmem:[%s3227_s1 + $0x164] sm:$0xf] }
  0x40   :  { %3286 = vst [vmem:[#allocation23_spill] sm:$0xff] %v2690_v33  ;;  %v1799_v61 = vcombine.low %v2685_v9, %v2690_v33  ;;  %3288 = vst [vmem:[#allocation25_spill] sm:$0xff] %v2719_v21  ;;  %v1792_v18 = vcombine.low %v2700_v17, %v2705_v13  ;;  %v2728_v33 = vld [vmem:[%s3227_s1 + $0x120] sm:$0xf]  ;;  %v2733_v9 = vld [vmem:[%s3227_s1 + $0x124] sm:$0xf] }
  0x41   :  { %v1177_v14 = vadd.f32 %v1176_v27, %v1175_v49  ;;  %v1027_v27 = vunpack.c.l.bf16 %v899_v62  ;;  %v901_v49 = vand.u32 2147450879, %v2202_v28  ;;  %v902_v62 = vand.u32 2147450879, %v2207_v31 }
  0x42   :  { %1915 = vmatpush3.bf16.msra.mxu1 %v1799_v61  ;;  %v905_v61 = vand.u32 2147450879, %v2290_v7  ;;  %1888 = vmatprep.subr.bf16.mxu0 %v1792_v18  ;;  %v1784_v50 = vcombine.low %v2728_v33, %v2733_v9  ;;  %v193_v18 = vld [vmem:[%s3226_s0 + $0x60] sm:$0xff] }
  0x43   :  { %v1179_v34 = vadd.f32 %v1178_v57, %v1177_v14  ;;  %v2714_v57 = vld [vmem:[%s3227_s1 + $0x1e0] sm:$0xf]  ;;  %v1028_v14 = vunpack.c.l.bf16 %v900_v59  ;;  %v1186_v31 = vsel %vm42_vm0, %v1027_v27, 0.0  ;;  %v903_v59 = vand.u32 2147450879, %v2246_v47 }
  0x44   :  { %3287 = vst [vmem:[#allocation24_spill] sm:$0xff] %v2714_v57  ;;  %v1808_v27 = vcombine.low %v2714_v57, %v2719_v21  ;;  %v1033_v21 = vunpack.c.l.bf16 %v905_v61  ;;  %1889 = vmatpush3.bf16.msra.mxu0 %v1784_v50  ;;  %v2776_v57 = vld [vmem:[%s3227_s1 + $0x16c] sm:$0xf]  ;;  %v906_v61 = vand.u32 2147450879, %v2295_v12 }
  0x45   :  { %v1181_v28 = vadd.f32 %v1180_v55, %v1179_v34  ;;  %v1029_v34 = vunpack.c.l.bf16 %v901_v49  ;;  %v1030_v49 = vunpack.c.l.bf16 %v902_v62  ;;  %v1188_v47 = vsel %vm42_vm0, %v1028_v14, 0.0 }
  0x46   :  { %1916 = vmatprep.subr.bf16.mxu1 %v1808_v27  ;;  %v1031_v14 = vunpack.c.l.bf16 %v903_v59  ;;  %v1032_v27 = vunpack.c.l.bf16 %v904_v24  ;;  %v1198_v12 = vsel %vm42_vm0, %v1033_v21, 0.0  ;;  %v908_v21 = vand.u32 2147450879, %v2339_v42 }
  0x47   :  { %v1183_v55 = vadd.f32 %v1182_v48, %v1181_v28  ;;  %v2743_v28 = vld [vmem:[%s3227_s1 + $0x1a0] sm:$0xf]  ;;  %v1190_v7 = vsel %vm42_vm0, %v1029_v34, 0.0  ;;  %v1192_v59 = vsel %vm42_vm0, %v1030_v49, 0.0 }
  0x48   :  { %3289 = vst [vmem:[#allocation26_spill] sm:$0xff] %v2743_v28  ;;  %v1800_v34 = vcombine.low %v2743_v28, %v2748_v53  ;;  %v171_v53 = vld [vmem:[%s3227_s1 + $0x1e8] sm:$0xf]  ;;  %v172_v28 = vld [vmem:[%s3227_s1 + $0x1ec] sm:$0xf]  ;;  %v1194_v49 = vsel %vm42_vm0, %v1031_v14, 0.0 }
  0x49   :  { %v1185_v48 = vadd.f32 %v1184_v63, %v1183_v55  ;;  %v189_v63 = vld [vmem:[%s3226_s0 + $0x40] sm:$0xff]  ;;  %v190_v55 = vld [vmem:[%s3226_s0 + $0x48] sm:$0xff]  ;;  %v1809_v15 = vcombine.low %v171_v53, %v172_v28 }
  0x4a   :  { %1917 = vmatpush3.bf16.msra.mxu1 %v1800_v34  ;;  %v1741_v50 = vcombine.high %v189_v63, %v193_v18  ;;  %v2800_v14 = vld [vmem:[%s3227_s1 + $0x12c] sm:$0xf] }
  0x4b   :  { %v1187_v62 = vadd.f32 %v1186_v31, %v1185_v48  ;;  %v194_v31 = vld [vmem:[%s3226_s0 + $0x68] sm:$0xff]  ;;  %1918 = vmatprep.subr.bf16.mxu1 %v1809_v15  ;;  %v2824_v15 = vld [vmem:[%s3227_s1 + $0x174] sm:$0xf] }
  0x4c   :  { %v2771_v48 = vld [vmem:[%s3227_s1 + $0x168] sm:$0xf]  ;;  %v1743_v56 = vcombine.high %v190_v55, %v194_v31  ;;  %701 = vmatprep.mubr.bf16.mxu0 %v1741_v50  ;;  %v1742_v53 = vcombine.low %v190_v55, %v194_v31  ;;  %3294 = vst [vmem:[#allocation31_spill] sm:$0xff] %v2824_v15 }
  0x4d   :  { %v1189_v24 = vadd.f32 %v1188_v47, %v1187_v62  ;;  %v1793_v20 = vcombine.low %v2771_v48, %v2776_v57  ;;  %v1196_v47 = vsel %vm42_vm0, %v1032_v27, 0.0  ;;  %v907_v62 = vand.u32 2147450879, %v2334_v37  ;;  %v2806_v37 = vld [vmem:[%s3227_s1 + $0x1a8] sm:$0xf] }
  0x4e   :  { %750 = vmatprep.mubr.bf16.mxu1 %v1743_v56  ;;  %v1034_v27 = vunpack.c.l.bf16 %v906_v61  ;;  %3291 = vst [vmem:[#allocation28_spill] sm:$0xff] %v2806_v37  ;;  %v2819_v61 = vld [vmem:[%s3227_s1 + $0x170] sm:$0xf] }
  0x4f   :  { %v1191_v32 = vadd.f32 %v1190_v7, %v1189_v24  ;;  %1890 = vmatprep.subr.bf16.mxu0 %v1793_v20  ;;  %v2795_v7 = vld [vmem:[%s3227_s1 + $0x128] sm:$0xf]  ;;  %v2811_v20 = vld [vmem:[%s3227_s1 + $0x1ac] sm:$0xf]  ;;  %v1035_v28 = vunpack.c.l.bf16 %v907_v62  ;;  %751 = vmatmul.mubr.bf16.gmra.mrb[4].mxu1 %v1742_v53  ;;  %3293 = vst [vmem:[#allocation30_spill] sm:$0xff] %v2819_v61 }
  0x50   :  { %3292 = vst [vmem:[#allocation29_spill] sm:$0xff] %v2811_v20  ;;  %v1785_v42 = vcombine.low %v2795_v7, %v2800_v14  ;;  %v1801_v55 = vcombine.low %v2806_v37, %v2811_v20 }
  0x51   :  { %v1193_v34 = vadd.f32 %v1192_v59, %v1191_v32  ;;  %v1740_v32 = vcombine.low %v189_v63, %v193_v18  ;;  %v909_v59 = vand.u32 2147450879, %v2378_v3  ;;  %v1200_v63 = vsel %vm42_vm0, %v1034_v27, 0.0 }
  0x52   :  { %v1036_v18 = vunpack.c.l.bf16 %v908_v21  ;;  %v910_v3 = vand.u32 2147450879, %v2383_v11  ;;  %1891 = vmatpush3.bf16.msra.mxu0 %v1785_v42 }
  0x53   :  { %v1195_v56 = vadd.f32 %v1194_v49, %v1193_v34  ;;  %702 = vmatmul.mubr.bf16.gmra.mrb[4].mxu0 %v1740_v32 }
  0x55   :  { %v1197_v24 = vadd.f32 %v1196_v47, %v1195_v56 }
  0x56   :  { %18 = vsyncpa [#allocation6], 0  ;;  %v2833_v50 = vld [vmem:[%s3227_s1 + $0x1f0] sm:$0xf]  ;;  %v2838_v49 = vld [vmem:[%s3227_s1 + $0x1f4] sm:$0xf]  ;;  %v1037_v62 = vunpack.c.l.bf16 %v909_v59  ;;  %1919 = vmatpush3.bf16.msra.mxu1 %v1801_v55  ;;  %v1794_v34 = vcombine.low %v2819_v61, %v2824_v15  ;;  %v1038_v32 = vunpack.c.l.bf16 %v910_v3 }
  0x57   :  { %v1199_v31 = vadd.f32 %v1198_v12, %v1197_v24  ;;  %3295 = vst [vmem:[#allocation32_spill] sm:$0xff] %v2833_v50  ;;  %3296 = vst [vmem:[#allocation33_spill] sm:$0xff] %v2838_v49  ;;  %v1202_v47 = vsel %vm42_vm0, %v1035_v28, 0.0  ;;  %v911_v11 = vand.u32 2147450879, %v2422_v46  ;;  %v1204_v56 = vsel %vm42_vm0, %v1036_v18, 0.0 }
  0x58   :  { %v2847_v27 = vld [vmem:[%s3227_s1 + $0x130] sm:$0xf]  ;;  %v2852_v21 = vld [vmem:[%s3227_s1 + $0x134] sm:$0xf]  ;;  %v912_v46 = vand.u32 2147450879, %v2427_v54  ;;  %1892 = vmatprep.subr.bf16.mxu0 %v1794_v34  ;;  %v1810_v53 = vcombine.low %v2833_v50, %v2838_v49 }
  0x59   :  { %v1201_v12 = vadd.f32 %v1200_v63, %v1199_v31  ;;  %v2861_v59 = vld [vmem:[%s3227_s1 + $0x1b0] sm:$0xf]  ;;  %v2866_v42 = vld [vmem:[%s3227_s1 + $0x1b4] sm:$0xf]  ;;  %v1206_v24 = vsel %vm42_vm0, %v1037_v62, 0.0  ;;  %v1039_v63 = vunpack.c.l.bf16 %v911_v11  ;;  %v1786_v18 = vcombine.low %v2847_v27, %v2852_v21 }
  0x5a   :  { %3297 = vst [vmem:[#allocation34_spill] sm:$0xff] %v2861_v59  ;;  %3298 = vst [vmem:[#allocation35_spill] sm:$0xff] %v2866_v42  ;;  %v913_v54 = vand.u32 2147450879, %v2468_v43  ;;  %1920 = vmatprep.subr.bf16.mxu1 %v1810_v53  ;;  %v2875_v55 = vld [vmem:[%s3227_s1 + $0x178] sm:$0xf]  ;;  %v1040_v62 = vunpack.c.l.bf16 %v912_v46  ;;  %v1802_v11 = vcombine.low %v2861_v59, %v2866_v42 }
  0x5b   :  { %v1203_v28 = vadd.f32 %v1202_v47, %v1201_v12  ;;  %3299 = vst [vmem:[#allocation36_spill] sm:$0xff] %v2875_v55  ;;  %v2880_v31 = vld [vmem:[%s3227_s1 + $0x17c] sm:$0xf]  ;;  %v1208_v47 = vsel %vm42_vm0, %v1038_v32, 0.0  ;;  %v914_v43 = vand.u32 2147450879, %v2480_v2  ;;  %1893 = vmatpush3.bf16.msra.mxu0 %v1786_v18 }
  0x5c   :  { %3300 = vst [vmem:[#allocation37_spill] sm:$0xff] %v2880_v31  ;;  %v915_v34 = vand.u32 2147450879, %v2140_v4  ;;  %v2895_v53 = vld [vmem:[%s3227_s1 + $0x1fc] sm:$0xf]  ;;  %v1210_v32 = vsel %vm42_vm0, %v1039_v63, 0.0  ;;  %v1041_v2 = vunpack.c.l.bf16 %v913_v54  ;;  %1921 = vmatpush3.bf16.msra.mxu1 %v1802_v11  ;;  %v1795_v46 = vcombine.low %v2875_v55, %v2880_v31 }
  0x5d   :  { %v1205_v3 = vadd.f32 %v1204_v56, %v1203_v28  ;;  %v2890_v56 = vld [vmem:[%s3227_s1 + $0x1f8] sm:$0xf]  ;;  %3302 = vst [vmem:[#allocation39_spill] sm:$0xff] %v2895_v53  ;;  %v916_v4 = vand.u32 2147450879, %v2145_v5  ;;  %v1212_v63 = vsel %vm42_vm0, %v1040_v62, 0.0  ;;  %v1042_v54 = vunpack.c.l.bf16 %v914_v43 }
  0x5e   :  { %3301 = vst [vmem:[#allocation38_spill] sm:$0xff] %v2890_v56  ;;  %v2909_v18 = vld [vmem:[%s3227_s1 + $0x13c] sm:$0xf]  ;;  %1894 = vmatprep.subr.bf16.mxu0 %v1795_v46  ;;  %v1043_v11 = vunpack.c.l.bf16 %v915_v34  ;;  %v917_v49 = vand.u32 2147450879, %v2180_v19  ;;  %v1214_v62 = vsel %vm42_vm0, %v1041_v2, 0.0 }
  0x5f   :  { %v1207_v12 = vadd.f32 %v1206_v24, %v1205_v3  ;;  %v2904_v24 = vld [vmem:[%s3227_s1 + $0x138] sm:$0xf]  ;;  %v1811_v3 = vcombine.low %v2890_v56, %v2895_v53  ;;  %v1044_v34 = vunpack.c.l.bf16 %v916_v4  ;;  %v187_v53 = vld [vmem:[%s3226_s0 + $0x30] sm:$0xff]  ;;  %v1216_v19 = vsel %vm42_vm0, %v1042_v54, 0.0 }
  0x60   :  { %v1787_v43 = vcombine.low %v2904_v24, %v2909_v18  ;;  %v184_v4 = vld [vmem:[%s3226_s0 + $0x18] sm:$0xff]  ;;  %v195_v54 = vld [vmem:[%s3226_s0 + $0x70] sm:$0xff]  ;;  %v1045_v50 = vunpack.c.l.bf16 %v917_v49  ;;  %v920_v20 = vand.u32 2147450879, %v2231_v40  ;;  %v922_v40 = vand.u32 2147450879, %v2275_v60 }
  0x61   :  { %v1209_v28 = vadd.f32 %v1208_v47, %v1207_v12  ;;  %v2917_v47 = vld [vmem:[%s3227_s1 + $0x1b8] sm:$0xf]  ;;  %v2922_v12 = vld [vmem:[%s3227_s1 + $0x1bc] sm:$0xf]  ;;  %1922 = vmatprep.subr.bf16.mxu1 %v1811_v3  ;;  %v1218_v3 = vsel %vm42_vm0, %v1043_v11, 0.0  ;;  %v1220_v11 = vsel %vm42_vm0, %v1044_v34, 0.0 }
  0x62   :  { %3303 = vst [vmem:[#allocation40_spill] sm:$0xff] %v2917_v47  ;;  %3304 = vst [vmem:[#allocation41_spill] sm:$0xff] %v2922_v12  ;;  %1895 = vmatpush3.bf16.msra.mxu0 %v1787_v43  ;;  %v1803_v2 = vcombine.low %v2917_v47, %v2922_v12  ;;  %v192_v43 = vld [vmem:[%s3226_s0 + $0x58] sm:$0xff]  ;;  %v919_v12 = vand.u32 2147450879, %v2226_v39  ;;  %v1222_v49 = vsel %vm42_vm0, %v1045_v50, 0.0 }
  0x63   :  { %v1211_v5 = vadd.f32 %v1210_v32, %v1209_v28  ;;  %v918_v32 = vand.u32 2147450879, %v2189_v23  ;;  %v183_v28 = vld [vmem:[%s3226_s0 + $0x10] sm:$0xff]  ;;  %v188_v23 = vld [vmem:[%s3226_s0 + $0x38] sm:$0xff]  ;;  %v921_v39 = vand.u32 2147450879, %v2268_v58 }
  0x64   :  { %v196_v56 = vld [vmem:[%s3226_s0 + $0x78] sm:$0xff]  ;;  %1923 = vmatpush3.bf16.msra.mxu1 %v1803_v2  ;;  %v1736_v47 = vcombine.low %v183_v28, %v187_v53  ;;  %v1737_v42 = vcombine.high %v183_v28, %v187_v53  ;;  %v1738_v59 = vcombine.low %v184_v4, %v188_v23  ;;  %v1739_v37 = vcombine.high %v184_v4, %v188_v23 }
  0x65   :  { %v1213_v46 = vadd.f32 %v1212_v63, %v1211_v5  ;;  %v191_v63 = vld [vmem:[%s3226_s0 + $0x50] sm:$0xff]  ;;  %v1747_v55 = vcombine.high %v192_v43, %v196_v56  ;;  %v1047_v61 = vunpack.c.l.bf16 %v919_v12  ;;  %v923_v50 = vand.u32 2147450879, %v2314_v25  ;;  %v3305_v25 = vld [vmem:[#allocation8_spill] sm:$0xff] }
  0x66   :  { %791 = vmatprep.mubr.bf16.mxu0 %v1737_v42  ;;  %v1745_v31 = vcombine.high %v191_v63, %v195_v54  ;;  %840 = vmatprep.mubr.bf16.mxu1 %v1739_v37  ;;  %v1744_v28 = vcombine.low %v191_v63, %v195_v54  ;;  %v1746_v2 = vcombine.low %v192_v43, %v196_v56  ;;  %v1050_v37 = vunpack.c.l.bf16 %v922_v40 }
  0x67   :  { %v1215_v5 = vadd.f32 %v1214_v62, %v1213_v46  ;;  %v1046_v62 = vunpack.c.l.bf16 %v918_v32  ;;  %792 = vmatmul.mubr.bf16.vlgmr.msra.gmra.mrb[8].mxu0 %v1736_v47  ;;  %841 = vmatmul.mubr.bf16.vlgmr.msra.gmra.mrb[8].mxu1 %v1738_v59  ;;  %v1048_v32 = vunpack.c.l.bf16 %v920_v20  ;;  %v1049_v47 = vunpack.c.l.bf16 %v921_v39 }
  0x68   :  { %799 = vmatprep.mubr.bf16.mxu0 %v1745_v31  ;;  %848 = vmatprep.mubr.bf16.mxu1 %v1747_v55  ;;  %v1051_v60 = vunpack.c.l.bf16 %v923_v50  ;;  %v925_v55 = vand.u32 2147450879, %v2356_v52  ;;  %v926_v23 = vand.u32 2147450879, %v3305_v25  ;;  %vm1685_vm5 = vcmask 57344  }
  0x69   :  { %v1217_v46 = vadd.f32 %v1216_v19, %v1215_v5  ;;  %v1224_v34 = vsel %vm42_vm0, %v1046_v62, 0.0  ;;  %v1226_v19 = vsel %vm42_vm0, %v1047_v61, 0.0  ;;  %v1228_v58 = vsel %vm42_vm0, %v1048_v32, 0.0  ;;  %v3306_v5 = vld [vmem:[#allocation9_spill] sm:$0xff]  ;;  %v3307_v62 = vld [vmem:[#allocation10_spill] sm:$0xff] }
  0x6a   :  { %v1230_v20 = vsel %vm42_vm0, %v1049_v47, 0.0  ;;  %v1232_v61 = vsel %vm42_vm0, %v1050_v37, 0.0  ;;  %v1234_v63 = vsel %vm42_vm0, %v1051_v60, 0.0  ;;  %vm1526_vm6 = vcmask 130048  }
  0x6b   :  { %v1219_v15 = vadd.f32 %v1218_v3, %v1217_v46  ;;  %v1053_v3 = vunpack.c.l.bf16 %v925_v55  ;;  %v928_v46 = vand.u32 2147450879, %v3307_v62  ;;  %v937_v62 = vand.u32 2147450879, %v2672_v44 }
  0x6c   :  { %vm1605_vm7 = vcmask 64512   ;;  %vm47_vm8 = vcmask 253952  }
  0x6d   :  { %v1221_v53 = vadd.f32 %v1220_v11, %v1219_v15  ;;  %v924_v15 = vand.u32 2147450879, %v2319_v26  ;;  %v927_v26 = vand.u32 2147450879, %v3306_v5  ;;  %v1054_v11 = vunpack.c.l.bf16 %v926_v23 }
  0x6e   :  { %v934_v23 = vand.u32 2147450879, %v2569_v6 }
  0x6f   :  { %v1223_v42 = vadd.f32 %v1222_v49, %v1221_v53  ;;  %800 = vmatmul.mubr.bf16.gmra.mrb[12].mxu0 %v1744_v28  ;;  %849 = vmatmul.mubr.bf16.gmra.mrb[12].mxu1 %v1746_v2  ;;  %v1052_v4 = vunpack.c.l.bf16 %v924_v15  ;;  %v1238_v49 = vsel %vm42_vm0, %v1053_v3, 0.0  ;;  %v1055_v39 = vunpack.c.l.bf16 %v927_v26  ;;  %v3308_v53 = vld [vmem:[#allocation11_spill] sm:$0xff]  ;;  %v3309_v28 = vld [vmem:[#allocation12_spill] sm:$0xff] }
  0x70   :  { %v1240_v40 = vsel %vm42_vm0, %v1054_v11, 0.0  ;;  %v931_v2 = vand.u32 2147450879, %v2512_v41  ;;  %v935_v3 = vand.u32 2147450879, %v2616_v0  ;;  %v1062_v26 = vunpack.c.l.bf16 %v934_v23 }
  0x71   :  { %v1225_v12 = vadd.f32 %v1224_v34, %v1223_v42  ;;  %v1236_v43 = vsel %vm42_vm0, %v1052_v4, 0.0  ;;  %v929_v34 = vand.u32 2147450879, %v3308_v53  ;;  %v1056_v42 = vunpack.c.l.bf16 %v928_v46 }
  0x72   :  { %v1242_v50 = vsel %vm42_vm0, %v1055_v39, 0.0  ;;  %v1059_v55 = vunpack.c.l.bf16 %v931_v2  ;;  %v1063_v11 = vunpack.c.l.bf16 %v935_v3  ;;  %v1256_v6 = vsel %vm42_vm0, %v1062_v26, 0.0 }
  0x73   :  { %v1227_v59 = vadd.f32 %v1226_v19, %v1225_v12  ;;  %v930_v19 = vand.u32 2147450879, %v3309_v28  ;;  %v1057_v12 = vunpack.c.l.bf16 %v929_v34  ;;  %v1244_v37 = vsel %vm42_vm0, %v1056_v42, 0.0 }
  0x74   :  { %v1250_v41 = vsel %vm42_vm0, %v1059_v55, 0.0  ;;  %v1258_v0 = vsel %vm42_vm0, %v1063_v11, 0.0  ;;  %v1065_v53 = vunpack.c.l.bf16 %v937_v62  ;;  %v939_v34 = vand.u32 2147450879, %v2728_v33 }
  0x75   :  { %v1229_v31 = vadd.f32 %v1228_v58, %v1227_v59  ;;  %v1058_v15 = vunpack.c.l.bf16 %v930_v19  ;;  %v932_v59 = vand.u32 2147450879, %v2517_v1  ;;  %v1246_v60 = vsel %vm42_vm0, %v1057_v12, 0.0 }
  0x76   :  { %v940_v42 = vand.u32 2147450879, %v2733_v9  ;;  %v1262_v44 = vsel %vm42_vm0, %v1065_v53, 0.0  ;;  %v1067_v19 = vunpack.c.l.bf16 %v939_v34  ;;  %v942_v2 = vand.u32 2147450879, %v2800_v14 }
  0x77   :  { %v1231_v56 = vadd.f32 %v1230_v20, %v1229_v31  ;;  %v933_v31 = vand.u32 2147450879, %v2564_v51  ;;  %v1248_v4 = vsel %vm42_vm0, %v1058_v15, 0.0  ;;  %v1060_v25 = vunpack.c.l.bf16 %v932_v59 }
  0x78   :  { %v1068_v12 = vunpack.c.l.bf16 %v940_v42  ;;  %v1266_v33 = vsel %vm42_vm0, %v1067_v19, 0.0  ;;  %v943_v15 = vand.u32 2147450879, %v2847_v27  ;;  %v946_v23 = vand.u32 2147450879, %v2909_v18 }
  0x79   :  { %v1233_v54 = vadd.f32 %v1232_v61, %v1231_v56  ;;  %v1252_v1 = vsel %vm42_vm0, %v1060_v25, 0.0  ;;  %v947_v27 = vand.u32 2147450879, %v2494_v29  ;;  %v950_v11 = vand.u32 2147450879, %v2549_v30 }
  0x7a   :  { %v1268_v9 = vsel %vm42_vm0, %v1068_v12, 0.0  ;;  %v953_v30 = vand.u32 2147450879, %v2643_v10  ;;  %v954_v42 = vand.u32 2147450879, %v2648_v45 }
  0x7b   :  { %v1235_v52 = vadd.f32 %v1234_v63, %v1233_v54  ;;  %v1061_v63 = vunpack.c.l.bf16 %v933_v31  ;;  %v936_v54 = vand.u32 2147450879, %v2621_v8  ;;  %v1071_v31 = vunpack.c.l.bf16 %v943_v15 }
  0x7c   :  { %v955_v19 = vand.u32 2147450879, %v2700_v17  ;;  %v958_v15 = vand.u32 2147450879, %v2776_v57 }
  0x7d   :  { %v1237_v32 = vadd.f32 %v1236_v43, %v1235_v52  ;;  %v1254_v51 = vsel %vm42_vm0, %v1061_v63, 0.0  ;;  %v1064_v52 = vunpack.c.l.bf16 %v936_v54  ;;  %v949_v54 = vand.u32 2147450879, %v2544_v36 }
  0x7e   :  { %v952_v36 = vand.u32 2147450879, %v2595_v38 }
  0x7f   :  { %v1239_v47 = vadd.f32 %v1238_v49, %v1237_v32  ;;  %v938_v49 = vand.u32 2147450879, %v2677_v16  ;;  %v1260_v8 = vsel %vm42_vm0, %v1064_v52, 0.0 }
  0x81   :  { %v1241_v58 = vadd.f32 %v1240_v40, %v1239_v47  ;;  %v1066_v40 = vunpack.c.l.bf16 %v938_v49  ;;  %v941_v47 = vand.u32 2147450879, %v2795_v7 }
  0x83   :  { %v1243_v20 = vadd.f32 %v1242_v50, %v1241_v58  ;;  %v1264_v16 = vsel %vm42_vm0, %v1066_v40, 0.0  ;;  %v1080_v40 = vunpack.c.l.bf16 %v952_v36 }
  0x85   :  { %v1245_v61 = vadd.f32 %v1244_v37, %v1243_v20  ;;  %v1069_v37 = vunpack.c.l.bf16 %v941_v47  ;;  %v1070_v20 = vunpack.c.l.bf16 %v942_v2  ;;  %v1292_v38 = vsel %vm42_vm0, %v1080_v40, 0.0 }
  0x86   :  { %v1083_v2 = vunpack.c.l.bf16 %v955_v19 }
  0x87   :  { %v1247_v56 = vadd.f32 %v1246_v60, %v1245_v61  ;;  %v944_v60 = vand.u32 2147450879, %v2852_v21  ;;  %v1270_v7 = vsel %vm42_vm0, %v1069_v37, 0.0  ;;  %v945_v61 = vand.u32 2147450879, %v2904_v24 }
  0x88   :  { %v1272_v14 = vsel %vm42_vm0, %v1070_v20, 0.0  ;;  %v948_v21 = vand.u32 2147450879, %v2499_v35  ;;  %v1075_v24 = vunpack.c.l.bf16 %v947_v27  ;;  %v951_v35 = vand.u32 2147450879, %v2590_v22  ;;  %v3310_v20 = vld [vmem:[#allocation30_spill] sm:$0xff] }
  0x89   :  { %v1249_v5 = vadd.f32 %v1248_v4, %v1247_v56  ;;  %v1072_v25 = vunpack.c.l.bf16 %v944_v60  ;;  %v1073_v63 = vunpack.c.l.bf16 %v945_v61  ;;  %v1298_v17 = vsel %vm42_vm0, %v1083_v2, 0.0 }
  0x8a   :  { %v1076_v18 = vunpack.c.l.bf16 %v948_v21  ;;  %v1079_v34 = vunpack.c.l.bf16 %v951_v35  ;;  %v959_v60 = vand.u32 2147450879, %v3310_v20  ;;  %v3314_v21 = vld [vmem:[#allocation13_spill] sm:$0xff] }
  0x8b   :  { %v1251_v43 = vadd.f32 %v1250_v41, %v1249_v5  ;;  %v1274_v41 = vsel %vm42_vm0, %v1071_v31, 0.0  ;;  %v1276_v5 = vsel %vm42_vm0, %v1072_v25, 0.0  ;;  %v3311_v31 = vld [vmem:[#allocation31_spill] sm:$0xff]  ;;  %v3312_v25 = vld [vmem:[#allocation36_spill] sm:$0xff] }
  0x8c   :  { %v1284_v49 = vsel %vm42_vm0, %v1076_v18, 0.0  ;;  %v1290_v22 = vsel %vm42_vm0, %v1079_v34, 0.0  ;;  %v960_v61 = vand.u32 2147450879, %v3311_v31  ;;  %v2032_v31 = vld [vmem:[%s3229_s3 + $0x8] sm:$0xff]  }
  0x8d   :  { %v1253_v46 = vadd.f32 %v1252_v1, %v1251_v43  ;;  %v1074_v1 = vunpack.c.l.bf16 %v946_v23  ;;  %v1278_v43 = vsel %vm42_vm0, %v1073_v63, 0.0  ;;  %v961_v23 = vand.u32 2147450879, %v3312_v25 }
  0x8e   :  { %v1088_v27 = vunpack.c.l.bf16 %v960_v61 }
  0x8f   :  { %v1255_v39 = vadd.f32 %v1254_v51, %v1253_v46  ;;  %v1280_v29 = vsel %vm42_vm0, %v1074_v1, 0.0  ;;  %v1282_v46 = vsel %vm42_vm0, %v1075_v24, 0.0  ;;  %v2065_v24 = vmov 0.0  }
  0x90   :  { %43 = vst.msk [vmem:[#allocation2] sm:$0xff] %vm42_vm0, %v2065_v24  ;;  %44 = vst.msk [vmem:[#allocation2 + $0x8] sm:$0xff] %vm42_vm0, %v2065_v24  ;;  %v1308_v18 = vsel %vm42_vm0, %v1088_v27, 0.0  ;;  %v3325_v27 = vld [vmem:[#allocation29_spill] sm:$0xff] }
  0x91   :  { %v1257_v32 = vadd.f32 %v1256_v6, %v1255_v39  ;;  %v1077_v6 = vunpack.c.l.bf16 %v949_v54  ;;  %v1078_v39 = vunpack.c.l.bf16 %v950_v11  ;;  %45 = vst.msk [vmem:[#allocation2 + $0x10] sm:$0xff] %vm42_vm0, %v2065_v24  ;;  %46 = vst.msk [vmem:[#allocation2 + $0x18] sm:$0xff] %vm42_vm0, %v2065_v24 }
  0x92   :  { %48 = vst.msk [vmem:[#allocation3] sm:$0x1] %vm47_vm8, %v2065_v24 }
  0x93   :  { %v1259_v28 = vadd.f32 %v1258_v0, %v1257_v32  ;;  %v1286_v53 = vsel %vm42_vm0, %v1077_v6, 0.0 }
  0x95   :  { %v1261_v50 = vadd.f32 %v1260_v8, %v1259_v28  ;;  %v1288_v8 = vsel %vm42_vm0, %v1078_v39, 0.0  ;;  %v3317_v39 = vld [vmem:[#allocation16_spill] sm:$0xff] }
  0x96   :  { %v966_v36 = vand.u32 2147450879, %v3317_v39  ;;  %v3329_v39 = vld [vmem:[#allocation41_spill] sm:$0xff] }
  0x97   :  { %v1263_v58 = vadd.f32 %v1262_v44, %v1261_v50  ;;  %v1081_v44 = vunpack.c.l.bf16 %v953_v30  ;;  %v1082_v50 = vunpack.c.l.bf16 %v954_v42 }
  0x99   :  { %v1265_v59 = vadd.f32 %v1264_v16, %v1263_v58  ;;  %v956_v16 = vand.u32 2147450879, %v2705_v13  ;;  %v1294_v10 = vsel %vm42_vm0, %v1081_v44, 0.0  ;;  %v957_v58 = vand.u32 2147450879, %v2771_v48 }
  0x9a   :  { %v1296_v45 = vsel %vm42_vm0, %v1082_v50, 0.0  ;;  %v3320_v50 = vld [vmem:[#allocation22_spill] sm:$0xff] }
  0x9b   :  { %v1267_v55 = vadd.f32 %v1266_v33, %v1265_v59  ;;  %v1084_v37 = vunpack.c.l.bf16 %v956_v16  ;;  %v969_v16 = vand.u32 2147450879, %v3320_v50 }
  0x9d   :  { %v1269_v4 = vadd.f32 %v1268_v9, %v1267_v55  ;;  %v1085_v9 = vunpack.c.l.bf16 %v957_v58  ;;  %v1300_v13 = vsel %vm42_vm0, %v1084_v37, 0.0  ;;  %v3321_v58 = vld [vmem:[#allocation23_spill] sm:$0xff] }
  0x9f   :  { %v1271_v56 = vadd.f32 %v1270_v7, %v1269_v4  ;;  %v1086_v7 = vunpack.c.l.bf16 %v958_v15  ;;  %v1302_v48 = vsel %vm42_vm0, %v1085_v9, 0.0  ;;  %v1097_v15 = vunpack.c.l.bf16 %v969_v16 }
  0xa1   :  { %v1273_v3 = vadd.f32 %v1272_v14, %v1271_v56  ;;  %v1087_v14 = vunpack.c.l.bf16 %v959_v60  ;;  %v1304_v57 = vsel %vm42_vm0, %v1086_v7, 0.0  ;;  %v2031_v7 = vld [vmem:[%s3229_s3] sm:$0xff]  }
  0xa2   :  { %1943 = vmatprep.subr.bf16.mxu0 %v2031_v7 }
  0xa3   :  { %v1275_v26 = vadd.f32 %v1274_v41, %v1273_v3  ;;  %v3313_v41 = vld [vmem:[#allocation37_spill] sm:$0xff]  ;;  %v1306_v1 = vsel %vm42_vm0, %v1087_v14, 0.0  ;;  %v3324_v14 = vld [vmem:[#allocation28_spill] sm:$0xff]  ;;  %1944 = vmatpush3.bf16.msra.mxu0 %v2031_v7 }
  0xa4   :  { %v962_v63 = vand.u32 2147450879, %v3313_v41  ;;  %v973_v25 = vand.u32 2147450879, %v3324_v14  ;;  %v974_v41 = vand.u32 2147450879, %v3325_v27  ;;  %1945 = vmatprep.subr.bf16.mxu0 %v2032_v31 }
  0xa5   :  { %v1277_v51 = vadd.f32 %v1276_v5, %v1275_v26  ;;  %v963_v5 = vand.u32 2147450879, %v3314_v21  ;;  %v1089_v26 = vunpack.c.l.bf16 %v961_v23 }
  0xa6   :  { %v1090_v11 = vunpack.c.l.bf16 %v962_v63  ;;  %v1101_v21 = vunpack.c.l.bf16 %v973_v25 }
  0xa7   :  { %v1279_v62 = vadd.f32 %v1278_v43, %v1277_v51  ;;  %v3315_v43 = vld [vmem:[#allocation14_spill] sm:$0xff]  ;;  %v1310_v35 = vsel %vm42_vm0, %v1089_v26, 0.0  ;;  %1946 = vmatpush3.bf16.msra.mxu0 %v2032_v31 }
  0xa8   :  { %v964_v51 = vand.u32 2147450879, %v3315_v43  ;;  %v1102_v43 = vunpack.c.l.bf16 %v974_v41 }
  0xa9   :  { %v1281_v52 = vadd.f32 %v1280_v29, %v1279_v62  ;;  %v1091_v62 = vunpack.c.l.bf16 %v963_v5  ;;  %v3326_v5 = vld [vmem:[#allocation34_spill] sm:$0xff] }
  0xab   :  { %v1283_v0 = vadd.f32 %v1282_v46, %v1281_v52  ;;  %v3316_v46 = vld [vmem:[#allocation15_spill] sm:$0xff]  ;;  %v1314_v34 = vsel %vm42_vm0, %v1091_v62, 0.0 }
  0xac   :  { %v965_v6 = vand.u32 2147450879, %v3316_v46  ;;  %v3328_v46 = vld [vmem:[#allocation40_spill] sm:$0xff] }
  0xad   :  { %v1285_v32 = vadd.f32 %v1284_v49, %v1283_v0  ;;  %v1092_v49 = vunpack.c.l.bf16 %v964_v51  ;;  %v1312_v0 = vsel %vm42_vm0, %v1090_v11, 0.0  ;;  %v3327_v51 = vld [vmem:[#allocation35_spill] sm:$0xff] }
  0xae   :  { %v1093_v30 = vunpack.c.l.bf16 %v965_v6  ;;  %v977_v6 = vand.u32 2147450879, %v3328_v46 }
  0xaf   :  { %v1287_v28 = vadd.f32 %v1286_v53, %v1285_v32  ;;  %v3318_v32 = vld [vmem:[#allocation18_spill] sm:$0xff]  ;;  %v1316_v42 = vsel %vm42_vm0, %v1092_v49, 0.0 }
  0xb1   :  { %v1289_v47 = vadd.f32 %v1288_v8, %v1287_v28  ;;  %v967_v8 = vand.u32 2147450879, %v3318_v32  ;;  %v1094_v28 = vunpack.c.l.bf16 %v966_v36  ;;  %v978_v36 = vand.u32 2147450879, %v3329_v39 }
  0xb2   :  { %v1105_v32 = vunpack.c.l.bf16 %v977_v6 }
  0xb3   :  { %v1291_v12 = vadd.f32 %v1290_v22, %v1289_v47  ;;  %v3319_v22 = vld [vmem:[#allocation19_spill] sm:$0xff]  ;;  %v1318_v47 = vsel %vm42_vm0, %v1093_v30, 0.0 }
  0xb4   :  { %v968_v44 = vand.u32 2147450879, %v3319_v22  ;;  %v1342_v16 = vsel %vm42_vm0, %v1105_v32, 0.0 }
  0xb5   :  { %v1293_v33 = vadd.f32 %v1292_v38, %v1291_v12  ;;  %v1095_v38 = vunpack.c.l.bf16 %v967_v8 }
  0xb6   :  { %v1096_v2 = vunpack.c.l.bf16 %v968_v44  ;;  %v1106_v44 = vunpack.c.l.bf16 %v978_v36 }
  0xb7   :  { %v1295_v59 = vadd.f32 %v1294_v10, %v1293_v33  ;;  %v1320_v10 = vsel %vm42_vm0, %v1094_v28, 0.0  ;;  %v970_v33 = vand.u32 2147450879, %v3321_v58  ;;  %v1322_v37 = vsel %vm42_vm0, %v1095_v38, 0.0  ;;  %v2036_v38 = vld [vmem:[%s3227_s1 + $0x1c8] sm:$0xf] }
  0xb8   :  { %v1324_v20 = vsel %vm42_vm0, %v1096_v2, 0.0  ;;  %v981_v50 = vand.u32 2147450879, %v2036_v38  ;;  %v2037_v2 = vld [vmem:[%s3227_s1 + $0x1cc] sm:$0xf] }
  0xb9   :  { %v1297_v55 = vadd.f32 %v1296_v45, %v1295_v59  ;;  %v3322_v59 = vld [vmem:[#allocation26_spill] sm:$0xff]  ;;  %v1098_v60 = vunpack.c.l.bf16 %v970_v33  ;;  %v982_v58 = vand.u32 2147450879, %v2037_v2  ;;  %v1344_v33 = vsel %vm42_vm0, %v1106_v44, 0.0 }
  0xbb   :  { %v1299_v4 = vadd.f32 %v1298_v17, %v1297_v55  ;;  %v971_v17 = vand.u32 2147450879, %v3322_v59  ;;  %v3323_v55 = vld [vmem:[#allocation27_spill] sm:$0xff]  ;;  %v3330_v59 = vld [vmem:[#allocation17_spill] sm:$0xff] }
  0xbd   :  { %v1301_v56 = vadd.f32 %v1300_v13, %v1299_v4  ;;  %v972_v13 = vand.u32 2147450879, %v3323_v55  ;;  %v1326_v4 = vsel %vm42_vm0, %v1097_v15, 0.0  ;;  %v1109_v15 = vunpack.c.l.bf16 %v981_v50  ;;  %v2038_v55 = vld [vmem:[%s3227_s1 + $0x1d4] sm:$0xf] }
  0xbf   :  { %v1303_v3 = vadd.f32 %v1302_v48, %v1301_v56  ;;  %v1099_v48 = vunpack.c.l.bf16 %v971_v17  ;;  %v1328_v56 = vsel %vm42_vm0, %v1098_v60, 0.0  ;;  %v983_v17 = vand.u32 2147450879, %v3330_v59 }
  0xc0   :  { %v1110_v60 = vunpack.c.l.bf16 %v982_v58  ;;  %v1350_v31 = vsel %vm42_vm0, %v1109_v15, 0.0 }
  0xc1   :  { %v1305_v54 = vadd.f32 %v1304_v57, %v1303_v3  ;;  %v1100_v57 = vunpack.c.l.bf16 %v972_v13  ;;  %v1330_v3 = vsel %vm42_vm0, %v1099_v48, 0.0  ;;  %v984_v13 = vand.u32 2147450879, %v2038_v55 }
  0xc2   :  { %v1352_v25 = vsel %vm42_vm0, %v1110_v60, 0.0 }
  0xc3   :  { %v1307_v29 = vadd.f32 %v1306_v1, %v1305_v54  ;;  %v975_v1 = vand.u32 2147450879, %v3326_v5  ;;  %v1332_v54 = vsel %vm42_vm0, %v1100_v57, 0.0 }
  0xc5   :  { %v1309_v52 = vadd.f32 %v1308_v18, %v1307_v29  ;;  %v976_v18 = vand.u32 2147450879, %v3327_v51  ;;  %v1334_v29 = vsel %vm42_vm0, %v1101_v21, 0.0  ;;  %v1103_v62 = vunpack.c.l.bf16 %v975_v1 }
  0xc7   :  { %v1311_v53 = vadd.f32 %v1310_v35, %v1309_v52  ;;  %v1336_v52 = vsel %vm42_vm0, %v1102_v43, 0.0  ;;  %v1104_v49 = vunpack.c.l.bf16 %v976_v18  ;;  %v1338_v30 = vsel %vm42_vm0, %v1103_v62, 0.0 }
  0xc9   :  { %v1313_v40 = vadd.f32 %v1312_v0, %v1311_v53  ;;  %v2034_v53 = vld [vmem:[%s3227_s1 + $0x1c0] sm:$0xf]  ;;  %v1340_v22 = vsel %vm42_vm0, %v1104_v49, 0.0 }
  0xcb   :  { %v1315_v19 = vadd.f32 %v1314_v34, %v1313_v40  ;;  %v979_v34 = vand.u32 2147450879, %v2034_v53  ;;  %v2033_v40 = vld [vmem:[%s3231_s5] sm:$0xff]  }
  0xcc   :  { %1951 = vmatprep.subr.bf16.mxu1 %v2033_v40 }
  0xcd   :  { %v1317_v12 = vadd.f32 %v1316_v42, %v1315_v19  ;;  %v2035_v42 = vld [vmem:[%s3227_s1 + $0x1c4] sm:$0xf]  ;;  %1952 = vmatpush3.bf16.msra.mxu1 %v2033_v40 }
  0xce   :  { %v980_v28 = vand.u32 2147450879, %v2035_v42 }
  0xcf   :  { %v1319_v45 = vadd.f32 %v1318_v47, %v1317_v12  ;;  %v1107_v47 = vunpack.c.l.bf16 %v979_v34 }
  0xd1   :  { %v1321_v9 = vadd.f32 %v1320_v10, %v1319_v45  ;;  %v1108_v10 = vunpack.c.l.bf16 %v980_v28 }
  0xd3   :  { %v1323_v61 = vadd.f32 %v1322_v37, %v1321_v9  ;;  %v1346_v37 = vsel %vm42_vm0, %v1107_v47, 0.0 }
  0xd5   :  { %v1325_v23 = vadd.f32 %v1324_v20, %v1323_v61  ;;  %v1348_v20 = vsel %vm42_vm0, %v1108_v10, 0.0  ;;  %v1111_v61 = vunpack.c.l.bf16 %v983_v17 }
  0xd7   :  { %v1327_v63 = vadd.f32 %v1326_v4, %v1325_v23  ;;  %v3331_v4 = vld [vmem:[#allocation20_spill] sm:$0xff]  ;;  %v1112_v23 = vunpack.c.l.bf16 %v984_v13  ;;  %v1354_v41 = vsel %vm42_vm0, %v1111_v61, 0.0 }
  0xd8   :  { %v985_v48 = vand.u32 2147450879, %v3331_v4 }
  0xd9   :  { %v1329_v26 = vadd.f32 %v1328_v56, %v1327_v63  ;;  %v3332_v56 = vld [vmem:[#allocation21_spill] sm:$0xff]  ;;  %v1356_v1 = vsel %vm42_vm0, %v1112_v23, 0.0 }
  0xda   :  { %v986_v57 = vand.u32 2147450879, %v3332_v56  ;;  %v1113_v63 = vunpack.c.l.bf16 %v985_v48  ;;  %v177_v56 = vld [vmem:[#allocation2] sm:$0xff] }
  0xdb   :  { %v1331_v11 = vadd.f32 %v1330_v3, %v1329_v26  ;;  %v3333_v3 = vld [vmem:[#allocation24_spill] sm:$0xff] }
  0xdc   :  { %v987_v21 = vand.u32 2147450879, %v3333_v3  ;;  %v1114_v26 = vunpack.c.l.bf16 %v986_v57  ;;  %v1358_v18 = vsel %vm42_vm0, %v1113_v63, 0.0  ;;  %v178_v3 = vld [vmem:[#allocation2 + $0x8] sm:$0xff] }
  0xdd   :  { %v1333_v35 = vadd.f32 %v1332_v54, %v1331_v11  ;;  %v3334_v54 = vld [vmem:[#allocation25_spill] sm:$0xff] }
  0xde   :  { %v988_v43 = vand.u32 2147450879, %v3334_v54  ;;  %v1115_v11 = vunpack.c.l.bf16 %v987_v21  ;;  %v1360_v62 = vsel %vm42_vm0, %v1114_v26, 0.0 }
  0xdf   :  { %v1335_v0 = vadd.f32 %v1334_v29, %v1333_v35 }
  0xe0   :  { %v1116_v46 = vunpack.c.l.bf16 %v988_v43  ;;  %v1362_v35 = vsel %vm42_vm0, %v1115_v11, 0.0 }
  0xe1   :  { %v1337_v8 = vadd.f32 %v1336_v52, %v1335_v0 }
  0xe2   :  { %v1364_v49 = vsel %vm42_vm0, %v1116_v46, 0.0 }
  0xe3   :  { %v1339_v19 = vadd.f32 %v1338_v30, %v1337_v8 }
  0xe5   :  { %v1341_v12 = vadd.f32 %v1340_v22, %v1339_v19 }
  0xe7   :  { %v1343_v45 = vadd.f32 %v1342_v16, %v1341_v12 }
  0xe9   :  { %v1345_v9 = vadd.f32 %v1344_v33, %v1343_v45 }
  0xeb   :  { %v1347_v7 = vadd.f32 %v1346_v37, %v1345_v9 }
  0xed   :  { %v1349_v14 = vadd.f32 %v1348_v20, %v1347_v7 }
  0xef   :  { %v1351_v27 = vadd.f32 %v1350_v31, %v1349_v14 }
  0xf1   :  { %v1353_v5 = vadd.f32 %v1352_v25, %v1351_v27 }
  0xf3   :  { %v1355_v51 = vadd.f32 %v1354_v41, %v1353_v5 }
  0xf5   :  { %v1357_v29 = vadd.f32 %v1356_v1, %v1355_v51 }
  0xf7   :  { %v1359_v6 = vadd.f32 %v1358_v18, %v1357_v29 }
  0xf9   :  { %v1361_v52 = vadd.f32 %v1360_v62, %v1359_v6 }
  0xfa   :  { %v1840_v36 = vpop.f32.mrb[0].mxu0 }
  0xfb   :  { %v1363_v39 = vadd.f32 %v1362_v35, %v1361_v52  ;;  %v1841_v34 = vpop.f32.mrb[1].mxu0  ;;  %v179_v52 = vld [vmem:[#allocation2 + $0x10] sm:$0xff] }
  0xfc   :  { %v1868_v53 = vpop.f32.mrb[0].mxu1  ;;  %v1842_v30 = vadd.f32 %v1841_v34, %v1840_v36  ;;  %v1843_v8 = vpop.f32.mrb[2].mxu0  ;;  %v180_v34 = vld [vmem:[#allocation2 + $0x18] sm:$0xff] }
  0xfd   :  { %v3127_v0 = vadd.f32 %v1364_v49, %v1363_v39  ;;  %v1869_v32 = vpop.f32.mrb[1].mxu1  ;;  %v1844_v28 = vpop.f32.mrb[3].mxu0 }
  0xfe   :  { %v1870_v40 = vadd.f32 %v1869_v32, %v1868_v53  ;;  %v1871_v42 = vpop.f32.mrb[2].mxu1  ;;  %v1845_v22 = vadd.f32 %v1844_v28, %v1843_v8 }
  0xff   :  { %v1872_v44 = vpop.f32.mrb[3].mxu1 }
 0x100   :  { %v745_v19 = vadd.f32 %v1870_v40, %v1842_v30  ;;  %v1873_v47 = vadd.f32 %v1872_v44, %v1871_v42  ;;  %v1812_v30 = vld [vmem:[%s3228_s2] ss:$0 sm:$0xff] }
 0x102   :  { %v748_v38 = vadd.f32 %v1873_v47, %v1845_v22 }
 0x122   :  { %v1874_v16 = vpop.f32.mrb[4].mxu1 }
 0x123   :  { %v1875_v10 = vpop.f32.mrb[5].mxu1 }
 0x124   :  { %v1876_v58 = vadd.f32 %v1875_v10, %v1874_v16  ;;  %v1877_v45 = vpop.f32.mrb[6].mxu1 }
 0x125   :  { %v1878_v15 = vpop.f32.mrb[7].mxu1 }
 0x126   :  { %v1846_v50 = vpop.f32.mrb[4].mxu0  ;;  %v1879_v9 = vadd.f32 %v1878_v15, %v1877_v45 }
 0x127   :  { %v1847_v12 = vpop.f32.mrb[5].mxu0 }
 0x128   :  { %v1848_v2 = vadd.f32 %v1847_v12, %v1846_v50  ;;  %v1849_v33 = vpop.f32.mrb[6].mxu0 }
 0x129   :  { %v1850_v37 = vpop.f32.mrb[7].mxu0 }
 0x12a   :  { %v753_v59 = vadd.f32 %v1876_v58, %v1848_v2  ;;  %v1851_v17 = vadd.f32 %v1850_v37, %v1849_v33 }
 0x12c   :  { %v756_v20 = vadd.f32 %v1879_v9, %v1851_v17  ;;  %v2039_v17 = vld [vmem:[%s3227_s1 + $0x1e8] sm:$0xf] }
 0x12d   :  { %v989_v9 = vand.u32 2147450879, %v2039_v17 }
 0x13a   :  { %v1896_v60 = vpop.f32.mrb[8].mxu0  ;;  %v1924_v13 = vpop.f32.mrb[8].mxu1 }
 0x13b   :  { %v1897_v55 = vpop.f32.mrb[9].mxu0  ;;  %v1925_v61 = vpop.f32.mrb[9].mxu1 }
 0x13c   :  { %v1898_v7 = vadd.f32 %v1897_v55, %v1896_v60  ;;  %v1899_v31 = vpop.f32.mrb[10].mxu0  ;;  %v1926_v14 = vadd.f32 %v1925_v61, %v1924_v13  ;;  %v1927_v25 = vpop.f32.mrb[10].mxu1  ;;  %v3335_v55 = vld [vmem:[#allocation32_spill] sm:$0xff]  ;;  %v1117_v61 = vunpack.c.l.bf16 %v989_v9 }
 0x13d   :  { %v1900_v4 = vpop.f32.mrb[11].mxu0  ;;  %v1928_v57 = vpop.f32.mrb[11].mxu1  ;;  %v991_v13 = vand.u32 2147450879, %v3335_v55 }
 0x13e   :  { %v794_v48 = vadd.f32 %v1898_v7, %v745_v19  ;;  %v1901_v23 = vadd.f32 %v1900_v4, %v1899_v31  ;;  %v1929_v63 = vadd.f32 %v1928_v57, %v1927_v25  ;;  %v3336_v7 = vld [vmem:[#allocation33_spill] sm:$0xff]  ;;  %v1366_v25 = vsel %vm42_vm0, %v1117_v61, 0.0  ;;  %v3338_v57 = vld [vmem:[#allocation39_spill] sm:$0xff] }
 0x13f   :  { %v992_v31 = vand.u32 2147450879, %v3336_v7 }
 0x140   :  { %v843_v27 = vadd.f32 %v1926_v14, %v794_v48  ;;  %v797_v41 = vadd.f32 %v1901_v23, %v748_v38  ;;  %v1119_v48 = vunpack.c.l.bf16 %v991_v13  ;;  %v3337_v23 = vld [vmem:[#allocation38_spill] sm:$0xff] }
 0x141   :  { %v1120_v14 = vunpack.c.l.bf16 %v992_v31  ;;  %v1813_v31 = vld [vmem:[%s3230_s4] ss:$0 sm:$0xff] }
 0x142   :  { %v857_v21 = vadd.f32 %v843_v27, %v177_v56  ;;  %v846_v5 = vadd.f32 %v1929_v63, %v797_v41  ;;  %v1902_v1 = vpop.f32.mrb[12].mxu0  ;;  %v1930_v43 = vpop.f32.mrb[12].mxu1  ;;  %v993_v56 = vand.u32 2147450879, %v3337_v23  ;;  %v994_v27 = vand.u32 2147450879, %v3338_v57 }
 0x143   :  { %v1903_v26 = vpop.f32.mrb[13].mxu0  ;;  %v1931_v11 = vpop.f32.mrb[13].mxu1  ;;  %v1370_v63 = vsel %vm42_vm0, %v1119_v48, 0.0 }
 0x144   :  { %862 = vst.msk [vmem:[#allocation2] sm:$0xff] %vm42_vm0, %v857_v21  ;;  %v858_v54 = vadd.f32 %v846_v5, %v178_v3  ;;  %v1904_v51 = vadd.f32 %v1903_v26, %v1902_v1  ;;  %v1905_v18 = vpop.f32.mrb[14].mxu0  ;;  %v1932_v46 = vadd.f32 %v1931_v11, %v1930_v43  ;;  %v1933_v6 = vpop.f32.mrb[14].mxu1  ;;  %v1372_v3 = vsel %vm42_vm0, %v1120_v14, 0.0  ;;  %v1634_v21 = vld [vmem:[%s3229_s3] sm:$0xf] }
 0x145   :  { %v1906_v29 = vpop.f32.mrb[15].mxu0  ;;  %v1934_v49 = vpop.f32.mrb[15].mxu1  ;;  %v1635_v5 = vld [vmem:[%s3229_s3 + $0x4] sm:$0xf]  ;;  %v1636_v1 = vld [vmem:[%s3229_s3 + $0x8] sm:$0xf]  ;;  %v1367_v26 = vadd.f32 %v1366_v25, %v3127_v0  ;;  %v1122_v11 = vunpack.c.l.bf16 %v994_v27 }
 0x146   :  { %863 = vst.msk [vmem:[#allocation2 + $0x8] sm:$0xff] %vm42_vm0, %v858_v54  ;;  %v802_v62 = vadd.f32 %v1904_v51, %v753_v59  ;;  %v1907_v35 = vadd.f32 %v1906_v29, %v1905_v18  ;;  %v1935_v53 = vadd.f32 %v1934_v49, %v1933_v6  ;;  %v1121_v54 = vunpack.c.l.bf16 %v993_v56  ;;  %v1637_v43 = vld [vmem:[%s3229_s3 + $0xc] sm:$0xf]  ;;  %v1663_v0 = vld [vmem:[%s3231_s5] sm:$0xf] }
 0x147   :  { %v1638_v51 = vand.u32 2147450879, %v1634_v21  ;;  %v1639_v18 = vand.u32 2147450879, %v1635_v5  ;;  %v1640_v29 = vand.u32 2147450879, %v1636_v1 }
 0x148   :  { %v851_v39 = vadd.f32 %v1932_v46, %v802_v62  ;;  %v805_v36 = vadd.f32 %v1907_v35, %v756_v20  ;;  %v2040_v20 = vld [vmem:[%s3227_s1 + $0x1ec] sm:$0xf]  ;;  %v1641_v62 = vand.u32 2147450879, %v1637_v43  ;;  %v1683_v46 = vld [vmem:[%s3233_s7] sm:$0x1] }
 0x149   :  { %v990_v60 = vand.u32 2147450879, %v2040_v20  ;;  %v1642_v35 = vunpack.c.l.bf16 %v1638_v51  ;;  %v1684_v49 = vand.u32 2147483647, %v1683_v46 }
 0x14a   :  { %v859_v32 = vadd.f32 %v851_v39, %v179_v52  ;;  %v854_v8 = vadd.f32 %v1935_v53, %v805_v36  ;;  %v1643_v52 = vunpack.c.l.bf16 %v1639_v18  ;;  %v1644_v39 = vunpack.c.l.bf16 %v1640_v29  ;;  %v1664_v53 = vld [vmem:[%s3231_s5 + $0x4] sm:$0xf] }
 0x14b   :  { %v1390_v40 = vld [vmem:[#allocation2] sm:$0xff]  ;;  %v1118_v4 = vunpack.c.l.bf16 %v990_v60  ;;  %v1645_v36 = vunpack.c.l.bf16 %v1641_v62 }
 0x14c   :  { %864 = vst.msk [vmem:[#allocation2 + $0x10] sm:$0xff] %vm42_vm0, %v859_v32  ;;  %v860_v42 = vadd.f32 %v854_v8, %v180_v34  ;;  %v1401_v28 = vadd.f32 %v1812_v30, %v1390_v40  ;;  %v1665_v34 = vand.u32 2147450879, %v1663_v0  ;;  %v1647_v32 = vsel %vm1526_vm6, %v1643_v52, 0.0  ;;  %v866_v60 = vld [vmem:[#allocation3] sm:$0x1] }
 0x14d   :  { %v1391_v22 = vld [vmem:[#allocation2 + $0x8] sm:$0xff]  ;;  %v1368_v41 = vsel %vm42_vm0, %v1118_v4, 0.0  ;;  %v1686_v8 = vsel %vm1685_vm5, %v1684_v49, 0.0  ;;  %v1666_v40 = vand.u32 2147450879, %v1664_v53 }
 0x14e   :  { %865 = vst.msk [vmem:[#allocation2 + $0x18] sm:$0xff] %vm42_vm0, %v860_v42  ;;  %v1402_v44 = vadd.f32 %v1812_v30, %v1391_v22  ;;  %v1409_v19 = vmul.f32 0.01, %v1401_v28  ;;  %vm1405_vm1 = vcmp.gt.f32.partialorder %v1401_v28, 0.0  ;;  %v1369_v6 = vadd.f32 %v1368_v41, %v1367_v26  ;;  %1687 = vadd.xlane.f32.xlu1 %v1686_v8 }
 0x14f   :  { %v1667_v22 = vunpack.c.l.bf16 %v1665_v34 }
 0x150   :  { %vm1406_vm2 = vcmp.gt.f32.partialorder %v1402_v44, 0.0  ;;  %v1410_v47 = vmul.f32 0.01, %v1402_v44  ;;  %v1413_v38 = vsel %vm1405_vm1, %v1401_v28, %v1409_v19  ;;  %v1649_v28 = vsel %vm1526_vm6, %v1644_v39, 0.0 }
 0x151   :  { %v1668_v19 = vunpack.c.l.bf16 %v1666_v40  ;;  %vm1712_vm1 = vcmask 0  }
 0x152   :  { %v1414_v50 = vsel %vm1406_vm2, %v1402_v44, %v1410_v47  ;;  %v1651_v44 = vsel %vm1526_vm6, %v1645_v36, 0.0  ;;  %v1371_v47 = vadd.f32 %v1370_v63, %v1369_v6 }
 0x153   :  { %v1392_v16 = vld [vmem:[#allocation2 + $0x10] sm:$0xff]  ;;  %v1417_v12 = vpack.c.bf16 %v1414_v50, %v1413_v38  ;;  %v1374_v38 = vsel %vm42_vm0, %v1121_v54, 0.0 }
 0x154   :  { %v1403_v10 = vadd.f32 %v1812_v30, %v1392_v16  ;;  %v1669_v16 = vsel %vm1605_vm7, %v1667_v22, 0.0 }
 0x155   :  { %v1393_v2 = vld [vmem:[#allocation2 + $0x18] sm:$0xff]  ;;  %1947 = vmatprep.mubr.msk.bf16.mxu0 %vm42_vm0, %v1417_v12  ;;  %v1670_v12 = vsel %vm1605_vm7, %v1668_v19, 0.0 }
 0x156   :  { %v1404_v58 = vadd.f32 %v1812_v30, %v1393_v2  ;;  %v1411_v33 = vmul.f32 0.01, %v1403_v10  ;;  %vm1407_vm3 = vcmp.gt.f32.partialorder %v1403_v10, 0.0  ;;  %v1646_v30 = vsel %vm1526_vm6, %v1642_v35, 0.0 }
 0x157   :  { %v1648_v42 = vadd.f32 %v1647_v32, %v1646_v30  ;;  %v1376_v2 = vsel %vm42_vm0, %v1122_v11, 0.0 }
 0x158   :  { %vm1408_vm4 = vcmp.gt.f32.partialorder %v1404_v58, 0.0  ;;  %v1412_v45 = vmul.f32 0.01, %v1404_v58  ;;  %v1415_v37 = vsel %vm1407_vm3, %v1403_v10, %v1411_v33  ;;  %v1373_v10 = vadd.f32 %v1372_v3, %v1371_v47 }
 0x159   :  { %v1650_v50 = vadd.f32 %v1649_v28, %v1648_v42 }
 0x15a   :  { %v1416_v15 = vsel %vm1408_vm4, %v1404_v58, %v1412_v45  ;;  %v1375_v33 = vadd.f32 %v1374_v38, %v1373_v10  ;;  %v1671_v45 = vadd.f32 %v1670_v12, %v1669_v16  ;;  %v1818_v12 = vld [vmem:[%s3232_s6] ss:$0 sm:$0xff] }
 0x15b   :  { %v1418_v59 = vpack.c.bf16 %v1416_v15, %v1415_v37  ;;  %v1652_v58 = vadd.f32 %v1651_v44, %v1650_v50 }
 0x15c   :  { %v1377_v37 = vadd.f32 %v1376_v2, %v1375_v33 }
 0x15d   :  { %1948 = vmatmul.mubr.msk.bf16.vlgmr.msra.gmra.mrb[16].mxu0 %vm42_vm0, %v1418_v59  ;;  %1653 = vadd.xlane.f32.xlu0 %v1652_v58 }
 0x15e   :  { %v1378_v15 = vrot.slane %v1377_v37, 4 }
 0x160   :  { %v1379_v59 = vadd.f32 %v1378_v15, %v1377_v37 }
 0x161   :  { %1672 = vadd.xlane.f32.xlu0 %v1671_v45 }
 0x162   :  { %v1380_v17 = vrot.slane %v1379_v59, 2 }
 0x164   :  { %v1381_v9 = vadd.f32 %v1380_v17, %v1379_v59 }
 0x166   :  { %v1382_v20 = vrot.slane %v1381_v9, 1 }
 0x168   :  { %v1383_v24 = vadd.f32 %v1382_v20, %v1381_v9 }
 0x16a   :  { %v1384_v55 = vadd.f32 %v1383_v24, %v866_v60  ;;  %v1822_v60 = vld [vmem:[%s3233_s7] ss:$0 sm:$0xff]  ;;  %s2066_s7 = smov [#allocation5]  }
 0x16b   :  { %s1722_s2 = sshll.u32 %s2066_s7, 4  ;;  %s1723_s2 = int_to_ptr.vmem [resolvable:$true] %s1722_s2 }
 0x16c   :  { %1386 = vst.msk [vmem:[#allocation3] sm:$0x1] %vm47_vm8, %v1384_v55  ;;  %s2041_s25 = scalar_lea.vmem %s1723_s2, 16  ;;  %s2045_s26 = scalar_lea.vmem %s1723_s2, 32 }
 0x16d   :  { %p2042_p0 = scmp.ne.s32.totalorder %s1723_s2, %s2041_s25  ;;  %p2046_p1 = scmp.lt.s32.totalorder %s1723_s2, %s1723_s2 }
 0x16e   :  { %p2047_p2 = scmp.lt.s32.totalorder %s2045_s26, %s2041_s25 }
 0x170   :  { %p2048_p3 = por %p2047_p2, %p2046_p1 }
 0x172   :  { %p2049_p4 = pnand %p2048_p3, %p2042_p0 }
 0x173   :  { %v1698_v13 = vld [vmem:[#allocation3] sm:$0x1] }
 0x174   :  { %v1699_v7 = vsel %vm47_vm8, %v1698_v13, 0.0 }
 0x175   :  { %1700 = vadd.xlane.f32.xlu1 %v1699_v7 }
 0x1db   :  { %v1688_v18 = vpop.xlane.xlu1 %1687 }
 0x1dc   :  { %v1689_v29 = vrot.slane %v1688_v18, 4 }
 0x1de   :  { %v1690_v46 = vadd.f32 %v1689_v29, %v1688_v18 }
 0x1e0   :  { %v1691_v49 = vrot.slane %v1690_v46, 2 }
 0x1e2   :  { %v1692_v30 = vadd.f32 %v1691_v49, %v1690_v46 }
 0x1e4   :  { %v1693_v42 = vrot.slane %v1692_v30, 1 }
 0x1e6   :  { %v1694_v38 = vadd.f32 %v1693_v42, %v1692_v30 }
 0x1ea   :  { %v1654_v51 = vpop.xlane.xlu0 %1653 }
 0x1eb   :  { %v1655_v11 = vrot.slane %v1654_v51, 4 }
 0x1ed   :  { %v1656_v62 = vadd.f32 %v1655_v11, %v1654_v51 }
 0x1ee   :  { %v1673_v6 = vpop.xlane.xlu0 %1672 }
 0x1ef   :  { %v1657_v52 = vrot.slane %v1656_v62, 2  ;;  %v1674_v0 = vrot.slane %v1673_v6, 4 }
 0x1f1   :  { %v1675_v36 = vadd.f32 %v1674_v0, %v1673_v6  ;;  %v1658_v34 = vadd.f32 %v1657_v52, %v1656_v62 }
 0x1f3   :  { %v1676_v32 = vrot.slane %v1675_v36, 2  ;;  %v1659_v40 = vrot.slane %v1658_v34, 1 }
 0x1f5   :  { %v1660_v28 = vadd.f32 %v1659_v40, %v1658_v34  ;;  %v1677_v22 = vadd.f32 %v1676_v32, %v1675_v36 }
 0x1f7   :  { %1957 = vpush %v1660_v28  ;;  %v1678_v19 = vrot.slane %v1677_v22, 1 }
 0x1f9   :  { %v1679_v50 = vadd.f32 %v1678_v19, %v1677_v22 }
 0x1fb   :  { %1959 = vpush %v1679_v50 }
 0x1fc   :  { %1961 = vpush %v1694_v38 }
 0x202   :  { %v1701_v35 = vpop.xlane.xlu1 %1700 }
 0x203   :  { %v1702_v39 = vrot.slane %v1701_v35, 4 }
 0x205   :  { %v1703_v53 = vadd.f32 %v1702_v39, %v1701_v35 }
 0x207   :  { %v1704_v8 = vrot.slane %v1703_v53, 2 }
 0x209   :  { %v1705_v44 = vadd.f32 %v1704_v8, %v1703_v53 }
 0x20b   :  { %v1706_v47 = vrot.slane %v1705_v44, 1 }
 0x20d   :  { %v1707_v16 = vadd.f32 %v1706_v47, %v1705_v44 }
 0x20f   :  { %1963 = vpush %v1707_v16 }
 0x228   :  { %s1958_s8 = spop %1957 }
 0x229   :  { %v1662_v17 = vstv %s1958_s8 }
 0x22c   :  { %s1960_s21 = spop %1959 }
 0x22d   :  { %v1681_v24 = vstv %s1960_s21  ;;  %s1962_s6 = spop %1961 }
 0x230   :  { %v1949_v61 = vpop.f32.mrb[16].mxu0 }
 0x231   :  { %v1491_v4 = vadd.f32 %v1949_v61, %v1813_v31  ;;  %v1482_v48 = vpop.f32.mrb[17].mxu0 }
 0x232   :  { %v1483_v14 = vadd.f32 %v1813_v31, %v1482_v48  ;;  %v1950_v25 = vpop.f32.mrb[18].mxu0 }
 0x233   :  { %v1503_v23 = vmul.f32 0.01, %v1491_v4  ;;  %v1494_v56 = vadd.f32 %v1950_v25, %v1813_v31  ;;  %v1485_v57 = vpop.f32.mrb[19].mxu0  ;;  %vm1499_vm9 = vcmp.gt.f32.partialorder %v1491_v4, 0.0  ;;  %v1696_v25 = vstv %s1962_s6 }
 0x234   :  { %v1501_v27 = vmul.f32 0.01, %v1483_v14  ;;  %v1486_v41 = vadd.f32 %v1813_v31, %v1485_v57  ;;  %vm1497_vm10 = vcmp.gt.f32.partialorder %v1483_v14, 0.0 }
 0x235   :  { %vm1500_vm11 = vcmp.gt.f32.partialorder %v1494_v56, 0.0  ;;  %v1504_v63 = vmul.f32 0.01, %v1494_v56  ;;  %v1507_v21 = vsel %vm1499_vm9, %v1491_v4, %v1503_v23  ;;  %v1682_v4 = vadd.f32 %v1681_v24, %v1662_v17 }
 0x236   :  { %vm1498_vm12 = vcmp.gt.f32.partialorder %v1486_v41, 0.0  ;;  %v1502_v3 = vmul.f32 0.01, %v1486_v41  ;;  %v1505_v1 = vsel %vm1497_vm10, %v1483_v14, %v1501_v27 }
 0x237   :  { %v1508_v5 = vsel %vm1500_vm11, %v1494_v56, %v1504_v63  ;;  %v1697_v63 = vadd.f32 %v1696_v25, %v1682_v4 }
 0x238   :  { %v1510_v26 = vpack.c.bf16 %v1508_v5, %v1507_v21  ;;  %v1506_v54 = vsel %vm1498_vm12, %v1486_v41, %v1502_v3 }
 0x239   :  { %v1509_v43 = vpack.c.bf16 %v1506_v54, %v1505_v1 }
 0x23b   :  { %1953 = vmatprep.mubr.msk.bf16.mxu1 %vm1526_vm6, %v1509_v43 }
 0x23c   :  { %1954 = vmatmul.mubr.msk.bf16.vlgmr.msra.gmra.mrb[16].mxu1 %vm1526_vm6, %v1510_v26 }
 0x240   :  { %s1964_s24 = spop %1963 }
 0x241   :  { %v1709_v3 = vstv %s1964_s24 }
 0x242   :  { %v1710_v1 = vadd.f32 %v1709_v3, %v1697_v63 }
 0x244   :  { %v1711_v26 = vmul.f32 0.125, %v1710_v1 }
 0x246   :  { %1713 = vst.msk [vmem:[#allocation5] sm:$0x1] %vm1712_vm1, %v1711_v26 }
 0x30f   :  { %v1955_v10 = vpop.f32.mrb[16].mxu1 }
 0x310   :  { %v1576_v2 = vadd.f32 %v1955_v10, %v1818_v12  ;;  %v1567_v58 = vpop.f32.mrb[17].mxu1 }
 0x311   :  { %v1568_v33 = vadd.f32 %v1818_v12, %v1567_v58  ;;  %v1956_v45 = vpop.f32.mrb[18].mxu1 }
 0x312   :  { %vm1584_vm13 = vcmp.gt.f32.partialorder %v1576_v2, 0.0  ;;  %v1588_v37 = vmul.f32 0.01, %v1576_v2  ;;  %v1579_v15 = vadd.f32 %v1956_v45, %v1818_v12  ;;  %v1570_v59 = vpop.f32.mrb[19].mxu1 }
 0x313   :  { %vm1582_vm14 = vcmp.gt.f32.partialorder %v1568_v33, 0.0  ;;  %v1586_v9 = vmul.f32 0.01, %v1568_v33  ;;  %v1571_v20 = vadd.f32 %v1818_v12, %v1570_v59 }
 0x314   :  { %vm1585_vm15 = vcmp.gt.f32.partialorder %v1579_v15, 0.0  ;;  %v1589_v55 = vmul.f32 0.01, %v1579_v15  ;;  %v1592_v31 = vsel %vm1584_vm13, %v1576_v2, %v1588_v37 }
 0x315   :  { %vm1583_vm0 = vcmp.gt.f32.partialorder %v1571_v20, 0.0  ;;  %v1587_v13 = vmul.f32 0.01, %v1571_v20  ;;  %v1590_v7 = vsel %vm1582_vm14, %v1568_v33, %v1586_v9  ;;  %v1603_v57 = vmul.f32 %v1822_v60, %v1592_v31 }
 0x316   :  { %v1601_v61 = vmul.f32 %v1822_v60, %v1590_v7  ;;  %v1593_v14 = vsel %vm1585_vm15, %v1579_v15, %v1589_v55 }
 0x317   :  { %v1591_v48 = vsel %vm1583_vm0, %v1571_v20, %v1587_v13  ;;  %v1604_v41 = vmul.f32 %v1822_v60, %v1593_v14  ;;  %v1612_v21 = vsel %vm1605_vm7, %v1603_v57, 0.0 }
 0x318   :  { %v1606_v23 = vsel %vm1605_vm7, %v1601_v61, 0.0  ;;  %v1602_v56 = vmul.f32 %v1822_v60, %v1591_v48 }
 0x319   :  { %1607 = vadd.xlane.f32.xlu0 %v1606_v23  ;;  %v1615_v5 = vsel %vm1605_vm7, %v1604_v41, 0.0 }
 0x31a   :  { %v1609_v27 = vsel %vm1605_vm7, %v1602_v56, 0.0 }
 0x31b   :  { %1610 = vadd.xlane.f32.xlu1 %v1609_v27 }
 0x31d   :  { %1613 = vadd.xlane.f32.xlu0 %v1612_v21 }
 0x31f   :  { %1616 = vadd.xlane.f32.xlu1 %v1615_v5 }
 0x320   :  { %2052 = shalt.err (!%p2049_p4)
}
 0x321   :  { %s2053_s28 = scalar_lea.hbm %s3236_s10, 16 }
 0x322   :  { %p2054_p5 = scmp.ne.s32.totalorder %s3236_s10, %s2053_s28  ;;  %p2057_p6 = scmp.lt.u32.totalorder %s2053_s28, %s3236_s10 }
 0x324   :  { %p2059_p7 = pnand %p2057_p6, %p2054_p5 }
 0x326   :  { %2062 = shalt.err (!%p2059_p7)
}
 0x327   :  { %1725 = dma.vmem_to_hbm [thread:$0]  %s1723_s2, 16, %s3236_s10, [#allocation6]   ;;  %v1823_v54 = vld [vmem:[#allocation4] ss:$0 sm:$0xff]  ;;  %vm1629_vm2 = vcmask 7168  }
 0x3a6   :  { %v1608_v43 = vpop.xlane.xlu0 %1607 }
 0x3a7   :  { %v1625_v51 = vadd.f32 %v1823_v54, %v1608_v43 }
 0x3a8   :  { %v1611_v18 = vpop.xlane.xlu1 %1610 }
 0x3a9   :  { %1630 = vst.msk [vmem:[%s3235_s9] sm:$0xff] %vm1629_vm2, %v1625_v51  ;;  %v1626_v11 = vadd.f32 %v1823_v54, %v1611_v18 }
 0x3aa   :  { %v1614_v29 = vpop.xlane.xlu0 %1613 }
 0x3ab   :  { %1631 = vst.msk [vmem:[%s3235_s9 + $0x8] sm:$0xff] %vm1629_vm2, %v1626_v11  ;;  %v1627_v62 = vadd.f32 %v1823_v54, %v1614_v29 }
 0x3ac   :  { %v1617_v46 = vpop.xlane.xlu1 %1616 }
 0x3ad   :  { %1632 = vst.msk [vmem:[%s3235_s9 + $0x10] sm:$0xff] %vm1629_vm2, %v1627_v62  ;;  %v1628_v6 = vadd.f32 %v1823_v54, %v1617_v46 }
 0x3af   :  { %1633 = vst.msk [vmem:[%s3235_s9 + $0x18] sm:$0xff] %vm1629_vm2, %v1628_v6 }
 0x3b0   :  { %2063 = dma.done.wait [#allocation6], 16  }
 0x3b1   :  { %2064 = vsyncadd [#allocation6], 4294967280 }
 0x3b2   :  { %1731 = vsyncpa [#allocation6], 1 }

</bundles_post_ra>
